<compile_context>
chip_gen: v7x
topology: tpu7x:2x2x1
jax: 0.10.0
libtpu: 0.0.40
codegen_flags: <defaults>
</compile_context>

<pallas_src>
import math

import jax
import jax.numpy as jnp
from jax.experimental import pallas as pl
from jax.experimental.pallas import tpu as pltpu

_OUT_W = 128  # lane-dense packed output width (boxes + validity + zero pad)


def _round_up(x, m):
    return -(-x // m) * m


def _safe_div(num, den):
    # Degenerate / zero-padded court points (equal y's) would give inf/NaN;
    # real inputs always have distinct y's so this is a no-op for them.
    den = jnp.where(den == 0.0, 1e-6, den)
    return num / den


def _make_kernel(K, HW, H_IMG, W_IMG, threshold, n_hw, out_w):
    inv_hw = 1.0 / float(HW)

    def kernel(obs_ref, bp_ref, w1_ref, w2_ref, b2_ref, out_ref, sum_ref):
        j = pl.program_id(1)

        # ---- streaming per-(image, channel) sum over H*W chunks -----------
        @pl.when(j == 0)
        def _():
            sum_ref[...] = jnp.zeros_like(sum_ref)

        x = obs_ref[...].astype(jnp.float32)              # (TB, C, THW) chunk
        sum_ref[...] += jnp.sum(x, axis=2)                # (TB, C)

        # ---- detection head + filtering only on the last H*W chunk --------
        @pl.when(j == n_hw - 1)
        def _():
            pooled = sum_ref[...] * inv_hw                # global mean pool
            feat = jnp.maximum(
                jnp.dot(pooled, w1_ref[...], preferred_element_type=jnp.float32),
                0.0)                                      # (TB, HID)
            raw = jnp.dot(feat, w2_ref[...],
                          preferred_element_type=jnp.float32) + b2_ref[...]

            sig = jax.nn.sigmoid(raw[:, :5 * K])          # one EUP pass
            cx = sig[:, 0 * K:1 * K] * W_IMG
            cy = sig[:, 1 * K:2 * K] * H_IMG
            bw = sig[:, 2 * K:3 * K] * (0.4 * W_IMG)
            bh = sig[:, 3 * K:4 * K] * (0.6 * H_IMG)
            score = sig[:, 4 * K:5 * K]
            person = raw[:, 5 * K:6 * K] > 0.0            # synthetic 'person'

            left = cx - 0.5 * bw
            right = cx + 0.5 * bw
            top = cy - 0.5 * bh
            bottom = cy + 0.5 * bh

            # Score filter.  Faster R-CNN scores are sorted descending, so the
            # original prefix-keep up to the last index above threshold equals
            # the {score > threshold} set.
            kept = score > threshold

            # ---------------- check_box_dimensions --------------------------
            h_rel = (bottom - top) / H_IMG
            bot_rel = bottom / H_IMG
            dim_bad = ((bot_rel > 0.6) & (h_rel < 55.0 / 560.0)) | (h_rel < 25.0 / 560.0)

            # ---------------- check_box_boundaries (trapezoids) -------------
            bp = bp_ref[...]                              # (TB, 12)

            def pt(i):
                return bp[:, 2 * i:2 * i + 1], bp[:, 2 * i + 1:2 * i + 2]

            base_x = 0.5 * (left + right)                 # (TB, K)
            base_y = bottom

            def in_trap(i0, i1, i2, i3):
                x0, y0 = pt(i0)
                x1, y1 = pt(i1)
                x2, y2 = pt(i2)
                x3, y3 = pt(i3)
                c_top = base_y >= jnp.minimum(y0, y1)
                c_bot = base_y <= jnp.maximum(y2, y3)
                dl = _safe_div(x2 - x0, y2 - y0)
                c_left = base_x >= (x0 + dl * (base_y - y0))
                dr = _safe_div(x3 - x1, y3 - y1)
                c_right = base_x <= (x1 + dr * (base_y - y1))
                return c_top & c_bot & c_left & c_right

            in_upper = in_trap(0, 1, 2, 3)                # field part 1
            in_lower = in_trap(2, 3, 4, 5)                # field part 2

            base_mask = kept & person & jnp.logical_not(dim_bad)
            mask1 = base_mask & in_upper
            mask2 = base_mask & jnp.logical_not(in_upper) & in_lower

            # ---------------- eliminate_duplicates reference lines ----------
            _, y0 = pt(0)
            _, y1 = pt(1)
            _, y2 = pt(2)
            _, y3 = pt(3)
            _, y4 = pt(4)
            _, y5 = pt(5)
            half_line = 0.5 * (y2 + y3)
            ref1 = 0.5 * (0.5 * (y0 + y1) + half_line)
            ref2 = 0.5 * (0.5 * (y4 + y5) + half_line)

            TB = base_mask.shape[0]
            iota = jax.lax.broadcasted_iota(jnp.int32, (TB, K), 1)

            def select(mask, ref_line):
                dist = jnp.abs(bottom - ref_line)
                masked = jnp.where(mask, dist, jnp.inf)
                mn = jnp.min(masked, axis=1, keepdims=True)        # (TB, 1)
                is_min = mask & (masked <= mn)
                first = jnp.min(jnp.where(is_min, iota, K), axis=1, keepdims=True)
                onehot = (iota == first).astype(jnp.float32)        # (TB, K)
                valid = jnp.sum(mask.astype(jnp.float32), axis=1, keepdims=True) > 0.0
                sel = [jnp.sum(v * onehot, axis=1, keepdims=True)
                       for v in (left, top, right, bottom)]
                row = jnp.concatenate(sel, axis=1)                  # (TB, 4)
                row = jnp.where(valid, row, 0.0)                    # fallback [0,0,0,0]
                return row, valid

            row1, v1 = select(mask1, ref1)                # upper-field player
            row2, v2 = select(mask2, ref2)                # lower-field player

            # torch.stack([match2, match1], dim=-1) and reversed(is_valid):
            # lane-dense slab [l2,t2,r2,b2, l1,t1,r1,b1, v2, v1, 0...0].
            zpad = jnp.zeros((TB, out_w - 10), jnp.float32)
            out_ref[...] = jnp.concatenate(
                [row2, row1, v2.astype(jnp.float32), v1.astype(jnp.float32), zpad],
                axis=1)                                   # (TB, OUT_W)

    return kernel


def tennis_player_detector(observations, bounding_points, params,
                           threshold=0.75, block_batch=None):
    """JAX/Pallas equivalent of TennisPlayerDetector.forward.

    observations: (..., C, H, W) any real dtype (f32/bf16/u8)
    bounding_points: (..., 6, 2) float
    returns: boxes (..., 4, 2) float32, valid (..., 2) bool
    """
    w1, w2, b2 = params
    *lead, C, H, W = observations.shape
    lead = tuple(lead)
    N = int(math.prod(lead)) if lead else 1
    HID = w1.shape[1]
    K = w2.shape[1] // 6
    HW = H * W
    itemsize = jnp.dtype(observations.dtype).itemsize
    c_pad = _round_up(C, 8)                       # VMEM sublane padding of C

    # ---------------- generation-aware VMEM budget ------------------------
    try:
        vmem_cap = int(pltpu.get_tpu_info().vmem_capacity_bytes)
    except Exception:
        vmem_cap = 64 << 20                       # conservative (v7x)
    usable = max(8 << 20, vmem_cap - (16 << 20))
    # per-block cost model: 2x double-buffered source block (sublane padded)
    # + one f32 cast intermediate + slack.
    p_factor = 2.0 + 4.0 / itemsize + 0.5
    big_vmem = vmem_cap >= (100 << 20)            # v5e / v6e: 128 MiB VMEM
    p_target = max(1 << 20, min(int(usable / p_factor),
                                (40 << 20) if big_vmem else (16 << 20)))

    img_pad_bytes = c_pad * HW * itemsize         # one padded image, full H*W
    # keep >= ~8 batch steps so the 'parallel' axis feeds both v7x cores and
    # the software pipeline has depth.
    steps_cap_tb = max(8, _round_up(-(-N // 8), 8))

    TB = None if block_batch is None else max(8, (int(block_batch) // 8) * 8)

    if 8 * img_pad_bytes <= p_target:
        # small images: whole images per block, no H*W split.
        THW, n_hw = HW, 1
        tb_budget = max(8, (p_target // img_pad_bytes) // 8 * 8)
        TB = min(tb_budget, steps_cap_tb, 4096) if TB is None else min(TB, tb_budget)
        if TB >= 128:
            TB = (TB // 128) * 128                # MXU-friendly M tile
        TB = max(8, TB)
    else:
        # large images: split H*W into a reduction ("arbitrary") grid axis.
        TB = min(128, steps_cap_tb) if TB is None else min(TB, steps_cap_tb)
        if TB >= 128:
            TB = (TB // 128) * 128
        TB = max(8, TB)
        chunk_cap = max(128, (p_target // (TB * c_pad * itemsize)) // 128 * 128)
        THW = 0
        t = min(chunk_cap, (HW // 128) * 128)
        t_floor = max(128, chunk_cap // 4)
        while t >= t_floor:                       # prefer chunks dividing H*W
            if HW % t == 0:
                THW = t
                break
            t -= 128
        if THW == 0:                              # fallback: pad H*W
            THW = min(chunk_cap, _round_up(HW, 128))
        while TB > 8 and TB * c_pad * THW * itemsize > p_target:
            TB = max(8, ((TB // 2) // 8) * 8)     # safety clamp
        n_hw = _round_up(HW, THW) // THW

    hw_pad = n_hw * THW

    # ---------------- layout / padding (HBM side) -------------------------
    obs3 = observations.reshape((N, C, HW))       # source dtype kept
    if hw_pad != HW:
        # zero padding is exact: it adds 0 to the sums, divided by true H*W.
        obs3 = jnp.pad(obs3, ((0, 0), (0, 0), (0, hw_pad - HW)))
    bp2 = bounding_points.reshape((N, 12)).astype(jnp.float32)

    n_pad = (-N) % TB
    if n_pad:
        obs3 = jnp.pad(obs3, ((0, n_pad), (0, 0), (0, 0)))
        bp2 = jnp.pad(bp2, ((0, n_pad), (0, 0)))
    n_total = N + n_pad
    nb = n_total // TB

    # ---------------- VMEM accounting for vmem_limit_bytes ----------------
    in_block = TB * c_pad * THW * itemsize        # sublane-padded source block
    f32_block = TB * c_pad * THW * 4              # cast intermediate
    bp_block = TB * 128 * 4                       # 12 lanes pad to 128
    out_block = TB * _OUT_W * 4
    w_bytes = 4 * (c_pad * _round_up(HID, 128)
                   + _round_up(HID, 8) * _round_up(6 * K, 128)
                   + 8 * _round_up(6 * K, 128))
    scratch_b = TB * 128 * 4                      # (TB, C) f32, lanes pad 128
    vmem_need = (2 * in_block + f32_block + 2 * (bp_block + out_block)
                 + 2 * w_bytes + scratch_b + (4 << 20))
    vmem_limit = int(max(16 << 20,
                         min(vmem_cap - (8 << 20), max(32 << 20, vmem_need))))

    kernel = _make_kernel(K, HW, float(H), float(W), float(threshold),
                          n_hw, _OUT_W)

    packed = pl.pallas_call(
        kernel,
        out_shape=jax.ShapeDtypeStruct((n_total, _OUT_W), jnp.float32),
        grid_spec=pltpu.PrefetchScalarGridSpec(
            num_scalar_prefetch=0,
            grid=(nb, n_hw),
            in_specs=[
                pl.BlockSpec((TB, C, THW), lambda i, j: (i, 0, j)),
                pl.BlockSpec((TB, 12), lambda i, j: (i, 0)),
                pl.BlockSpec((C, HID), lambda i, j: (0, 0)),
                pl.BlockSpec((HID, 6 * K), lambda i, j: (0, 0)),
                pl.BlockSpec((1, 6 * K), lambda i, j: (0, 0)),
            ],
            out_specs=pl.BlockSpec((TB, _OUT_W), lambda i, j: (i, 0)),
            scratch_shapes=[pltpu.VMEM((TB, C), jnp.float32)]),
        compiler_params=pltpu.CompilerParams(
            dimension_semantics=("parallel", "arbitrary"),
            vmem_limit_bytes=vmem_limit),
    )(obs3, bp2, w1, w2, b2)

    # cols 0:8 = [lower-field box, upper-field box]; cols 8:10 = [v2, v1].
    boxes = packed[:N, :8].reshape(N, 2, 4).transpose(0, 2, 1)     # (N, 4, 2)
    valid = packed[:N, 8:10] > 0.5                                 # (N, 2) bool

    boxes = boxes.reshape(lead + (4, 2))
    valid = valid.reshape(lead + (2,))
    return boxes, valid


if __name__ == "__main__":
    key = jax.random.PRNGKey(0)
    k_obs, k_w1, k_w2 = jax.random.split(key, 3)

    C, H, W = 3, 16, 16
    HID, K = 32, 8
    lead = (4, 4)            # 16 images

    observations = jax.random.uniform(k_obs, lead + (C, H, W), jnp.float32)

    # Court-like bounding points (x, y): top-L, top-R, mid-L, mid-R, bot-L, bot-R.
    bp_single = jnp.array(
        [[3.0, 4.0], [13.0, 4.0], [2.0, 8.0], [14.0, 8.0], [1.0, 14.0], [15.0, 14.0]],
        jnp.float32)
    bounding_points = jnp.broadcast_to(bp_single, lead + (6, 2))

    # Deterministic synthetic detector-head parameters.
    w1 = jax.random.normal(k_w1, (C, HID), jnp.float32) * 0.5
    w2 = jax.random.normal(k_w2, (HID, 6 * K), jnp.float32) * 0.3
    b2 = jnp.concatenate(
        [jnp.zeros((1, K)), jnp.zeros((1, K)), jnp.zeros((1, K)), jnp.zeros((1, K)),
         jnp.full((1, K), 2.0), jnp.full((1, K), 1.0)],
        axis=1).astype(jnp.float32)

    boxes, valid = tennis_player_detector(observations, bounding_points, (w1, w2, b2))
    jax.block_until_ready((boxes, valid))

    assert boxes.shape == lead + (4, 2) and boxes.dtype == jnp.float32
    assert valid.shape == lead + (2,) and valid.dtype == jnp.bool_
    print("KERNEL_OK")
</pallas_src>

<mosaic_0001>
module attributes {stable_mosaic.version = 11 : i64} {
  func.func @kernel(%arg0: i32, %arg1: i32, %arg2: memref<8x3x256xf32, #tpu.memory_space<vmem>>, %arg3: memref<8x12xf32, #tpu.memory_space<vmem>>, %arg4: memref<3x32xf32, #tpu.memory_space<vmem>>, %arg5: memref<32x48xf32, #tpu.memory_space<vmem>>, %arg6: memref<1x48xf32, #tpu.memory_space<vmem>>, %arg7: memref<8x128xf32, #tpu.memory_space<vmem>>, %arg8: memref<8x3xf32, #tpu.memory_space<vmem>>) attributes {dimension_semantics = [#tpu.dimension_semantics<parallel>, #tpu.dimension_semantics<arbitrary>], iteration_bounds = array<i64: 2, 1>, scalar_prefetch = 0 : i64, scratch_operands = 1 : i64, tpu.core_type = #tpu.core_type<tc>, window_params = [{transform_indices = @transform_0, window_bounds = array<i64: 8, 3, 256>}, {transform_indices = @transform_1, window_bounds = array<i64: 8, 12>}, {pipeline_mode = #tpu.pipeline_mode<synchronous>, transform_indices = @transform_2, window_bounds = array<i64: 3, 32>}, {pipeline_mode = #tpu.pipeline_mode<synchronous>, transform_indices = @transform_3, window_bounds = array<i64: 32, 48>}, {pipeline_mode = #tpu.pipeline_mode<synchronous>, transform_indices = @transform_4, window_bounds = array<i64: 1, 48>}, {transform_indices = @transform_5, window_bounds = array<i64: 8, 128>}]} {
    %c0_i32 = arith.constant 0 : i32
    %0 = arith.cmpi eq, %arg1, %c0_i32 : i32
    %1 = arith.extui %0 : i1 to i32
    %c0_i32_0 = arith.constant 0 : i32
    %2 = arith.cmpi ne, %1, %c0_i32_0 : i32
    scf.if %2 {
      %cst_9 = arith.constant 0.000000e+00 : f32
      %11 = vector.broadcast %cst_9 : f32 to vector<8x3xf32>
      %c0_10 = arith.constant 0 : index
      %c0_11 = arith.constant 0 : index
      %12 = vector.load %arg8[%c0_10, %c0_11] : memref<8x3xf32, #tpu.memory_space<vmem>>, vector<8x3xf32>
      tpu.vector_store %arg8[%c0_10, %c0_11], %11 {strides = array<i32>} : memref<8x3xf32, #tpu.memory_space<vmem>>, vector<8x3xf32>,
    } else {
    }
    %c0 = arith.constant 0 : index
    %c0_1 = arith.constant 0 : index
    %c0_2 = arith.constant 0 : index
    %3 = vector.load %arg2[%c0, %c0_1, %c0_2] : memref<8x3x256xf32, #tpu.memory_space<vmem>>, vector<8x3x256xf32>
    %c0_3 = arith.constant 0 : index
    %c0_4 = arith.constant 0 : index
    %4 = vector.load %arg8[%c0_3, %c0_4] : memref<8x3xf32, #tpu.memory_space<vmem>>, vector<8x3xf32>
    %cst = arith.constant dense<0.000000e+00> : vector<8x3xf32>
    %5 = vector.multi_reduction <add>, %3, %cst [2] : vector<8x3x256xf32> to vector<8x3xf32>
    %6 = arith.addf %4, %5 : vector<8x3xf32>
    %c0_5 = arith.constant 0 : index
    %c0_6 = arith.constant 0 : index
    %7 = vector.load %arg8[%c0_5, %c0_6] : memref<8x3xf32, #tpu.memory_space<vmem>>, vector<8x3xf32>
    tpu.vector_store %arg8[%c0_5, %c0_6], %6 {strides = array<i32>} : memref<8x3xf32, #tpu.memory_space<vmem>>, vector<8x3xf32>,
    %c0_i32_7 = arith.constant 0 : i32
    %8 = arith.cmpi eq, %arg1, %c0_i32_7 : i32
    %9 = arith.extui %8 : i1 to i32
    %c0_i32_8 = arith.constant 0 : i32
    %10 = arith.cmpi ne, %9, %c0_i32_8 : i32
    scf.if %10 {
      %c0_9 = arith.constant 0 : index
      %c0_10 = arith.constant 0 : index
      %11 = vector.load %arg8[%c0_9, %c0_10] : memref<8x3xf32, #tpu.memory_space<vmem>>, vector<8x3xf32>
      %cst_11 = arith.constant 3.906250e-03 : f32
      %12 = vector.broadcast %cst_11 : f32 to vector<8x3xf32>
      %13 = arith.mulf %11, %12 : vector<8x3xf32>
      %c0_12 = arith.constant 0 : index
      %c0_13 = arith.constant 0 : index
      %14 = vector.load %arg4[%c0_12, %c0_13] : memref<3x32xf32, #tpu.memory_space<vmem>>, vector<3x32xf32>
      %cst_14 = arith.constant dense<0.000000e+00> : vector<8x32xf32>
      %15 = tpu.matmul %13, %14, %cst_14 {dimension_numbers = #tpu.dot_dimension_numbers<[1], [0], [0], [1], [0, 0, 1, 1], [], []>} : vector<8x3xf32>, vector<3x32xf32>, vector<8x32xf32> -> vector<8x32xf32>
      %cst_15 = arith.constant 0.000000e+00 : f32
      %16 = vector.broadcast %cst_15 : f32 to vector<8x32xf32>
      %17 = arith.maximumf %15, %16 : vector<8x32xf32>
      %c0_16 = arith.constant 0 : index
      %c0_17 = arith.constant 0 : index
      %18 = vector.load %arg5[%c0_16, %c0_17] : memref<32x48xf32, #tpu.memory_space<vmem>>, vector<32x48xf32>
      %cst_18 = arith.constant dense<0.000000e+00> : vector<8x48xf32>
      %19 = tpu.matmul %17, %18, %cst_18 {dimension_numbers = #tpu.dot_dimension_numbers<[1], [0], [0], [1], [0, 0, 1, 1], [], []>} : vector<8x32xf32>, vector<32x48xf32>, vector<8x48xf32> -> vector<8x48xf32>
      %c0_19 = arith.constant 0 : index
      %c0_20 = arith.constant 0 : index
      %20 = vector.load %arg6[%c0_19, %c0_20] : memref<1x48xf32, #tpu.memory_space<vmem>>, vector<1x48xf32>
      %21 = vector.broadcast %20 : vector<1x48xf32> to vector<8x48xf32>
      %22 = arith.addf %19, %21 : vector<8x48xf32>
      %23 = vector.extract_strided_slice %22 {offsets = [0, 0], sizes = [8, 40], strides = [1, 1]} : vector<8x48xf32> to vector<8x40xf32>
      %24 = arith.negf %23 : vector<8x40xf32>
      %25 = math.exp %24 : vector<8x40xf32>
      %cst_21 = arith.constant 1.000000e+00 : f32
      %26 = vector.broadcast %cst_21 : f32 to vector<8x40xf32>
      %27 = arith.addf %26, %25 : vector<8x40xf32>
      %28 = arith.divf %26, %27 : vector<8x40xf32>
      %29 = vector.extract_strided_slice %28 {offsets = [0, 0], sizes = [8, 8], strides = [1, 1]} : vector<8x40xf32> to vector<8x8xf32>
      %cst_22 = arith.constant 1.600000e+01 : f32
      %30 = vector.broadcast %cst_22 : f32 to vector<8x8xf32>
      %31 = arith.mulf %29, %30 : vector<8x8xf32>
      %32 = vector.extract_strided_slice %28 {offsets = [0, 8], sizes = [8, 8], strides = [1, 1]} : vector<8x40xf32> to vector<8x8xf32>
      %cst_23 = arith.constant 1.600000e+01 : f32
      %33 = vector.broadcast %cst_23 : f32 to vector<8x8xf32>
      %34 = arith.mulf %32, %33 : vector<8x8xf32>
      %35 = vector.extract_strided_slice %28 {offsets = [0, 16], sizes = [8, 8], strides = [1, 1]} : vector<8x40xf32> to vector<8x8xf32>
      %cst_24 = arith.constant 6.400000e+00 : f32
      %36 = vector.broadcast %cst_24 : f32 to vector<8x8xf32>
      %37 = arith.mulf %35, %36 : vector<8x8xf32>
      %38 = vector.extract_strided_slice %28 {offsets = [0, 24], sizes = [8, 8], strides = [1, 1]} : vector<8x40xf32> to vector<8x8xf32>
      %cst_25 = arith.constant 9.600000e+00 : f32
      %39 = vector.broadcast %cst_25 : f32 to vector<8x8xf32>
      %40 = arith.mulf %38, %39 : vector<8x8xf32>
      %41 = vector.extract_strided_slice %28 {offsets = [0, 32], sizes = [8, 8], strides = [1, 1]} : vector<8x40xf32> to vector<8x8xf32>
      %42 = vector.extract_strided_slice %22 {offsets = [0, 40], sizes = [8, 8], strides = [1, 1]} : vector<8x48xf32> to vector<8x8xf32>
      %cst_26 = arith.constant 0.000000e+00 : f32
      %43 = vector.broadcast %cst_26 : f32 to vector<8x8xf32>
      %44 = arith.cmpf ogt, %42, %43 : vector<8x8xf32>
      %cst_27 = arith.constant 5.000000e-01 : f32
      %45 = vector.broadcast %cst_27 : f32 to vector<8x8xf32>
      %46 = arith.mulf %45, %37 : vector<8x8xf32>
      %47 = arith.subf %31, %46 : vector<8x8xf32>
      %cst_28 = arith.constant 5.000000e-01 : f32
      %48 = vector.broadcast %cst_28 : f32 to vector<8x8xf32>
      %49 = arith.mulf %48, %37 : vector<8x8xf32>
      %50 = arith.addf %31, %49 : vector<8x8xf32>
      %cst_29 = arith.constant 5.000000e-01 : f32
      %51 = vector.broadcast %cst_29 : f32 to vector<8x8xf32>
      %52 = arith.mulf %51, %40 : vector<8x8xf32>
      %53 = arith.subf %34, %52 : vector<8x8xf32>
      %cst_30 = arith.constant 5.000000e-01 : f32
      %54 = vector.broadcast %cst_30 : f32 to vector<8x8xf32>
      %55 = arith.mulf %54, %40 : vector<8x8xf32>
      %56 = arith.addf %34, %55 : vector<8x8xf32>
      %cst_31 = arith.constant 7.500000e-01 : f32
      %57 = vector.broadcast %cst_31 : f32 to vector<8x8xf32>
      %58 = arith.cmpf ogt, %41, %57 : vector<8x8xf32>
      %59 = arith.subf %56, %53 : vector<8x8xf32>
      %cst_32 = arith.constant 1.600000e+01 : f32
      %60 = vector.broadcast %cst_32 : f32 to vector<8x8xf32>
      %61 = arith.divf %59, %60 : vector<8x8xf32>
      %cst_33 = arith.constant 1.600000e+01 : f32
      %62 = vector.broadcast %cst_33 : f32 to vector<8x8xf32>
      %63 = arith.divf %56, %62 : vector<8x8xf32>
      %cst_34 = arith.constant 6.000000e-01 : f32
      %64 = vector.broadcast %cst_34 : f32 to vector<8x8xf32>
      %65 = arith.cmpf ogt, %63, %64 : vector<8x8xf32>
      %cst_35 = arith.constant 0.0982142835 : f32
      %66 = vector.broadcast %cst_35 : f32 to vector<8x8xf32>
      %67 = arith.cmpf olt, %61, %66 : vector<8x8xf32>
      %68 = arith.andi %65, %67 : vector<8x8xi1>
      %cst_36 = arith.constant 0.0446428582 : f32
      %69 = vector.broadcast %cst_36 : f32 to vector<8x8xf32>
      %70 = arith.cmpf olt, %61, %69 : vector<8x8xf32>
      %71 = arith.ori %68, %70 : vector<8x8xi1>
      %c0_37 = arith.constant 0 : index
      %c0_38 = arith.constant 0 : index
      %72 = vector.load %arg3[%c0_37, %c0_38] : memref<8x12xf32, #tpu.memory_space<vmem>>, vector<8x12xf32>
      %73 = arith.addf %47, %50 : vector<8x8xf32>
      %cst_39 = arith.constant 5.000000e-01 : f32
      %74 = vector.broadcast %cst_39 : f32 to vector<8x8xf32>
      %75 = arith.mulf %74, %73 : vector<8x8xf32>
      %76 = vector.extract_strided_slice %72 {offsets = [0, 0], sizes = [8, 1], strides = [1, 1]} : vector<8x12xf32> to vector<8x1xf32>
      %77 = vector.extract_strided_slice %72 {offsets = [0, 1], sizes = [8, 1], strides = [1, 1]} : vector<8x12xf32> to vector<8x1xf32>
      %78 = vector.extract_strided_slice %72 {offsets = [0, 2], sizes = [8, 1], strides = [1, 1]} : vector<8x12xf32> to vector<8x1xf32>
      %79 = vector.extract_strided_slice %72 {offsets = [0, 3], sizes = [8, 1], strides = [1, 1]} : vector<8x12xf32> to vector<8x1xf32>
      %80 = vector.extract_strided_slice %72 {offsets = [0, 4], sizes = [8, 1], strides = [1, 1]} : vector<8x12xf32> to vector<8x1xf32>
      %81 = vector.extract_strided_slice %72 {offsets = [0, 5], sizes = [8, 1], strides = [1, 1]} : vector<8x12xf32> to vector<8x1xf32>
      %82 = vector.extract_strided_slice %72 {offsets = [0, 6], sizes = [8, 1], strides = [1, 1]} : vector<8x12xf32> to vector<8x1xf32>
      %83 = vector.extract_strided_slice %72 {offsets = [0, 7], sizes = [8, 1], strides = [1, 1]} : vector<8x12xf32> to vector<8x1xf32>
      %84 = arith.minimumf %77, %79 : vector<8x1xf32>
      %85 = vector.broadcast %84 : vector<8x1xf32> to vector<8x8xf32>
      %86 = arith.cmpf oge, %56, %85 : vector<8x8xf32>
      %87 = arith.maximumf %81, %83 : vector<8x1xf32>
      %88 = vector.broadcast %87 : vector<8x1xf32> to vector<8x8xf32>
      %89 = arith.cmpf ole, %56, %88 : vector<8x8xf32>
      %90 = arith.subf %80, %76 : vector<8x1xf32>
      %91 = arith.subf %81, %77 : vector<8x1xf32>
      %cst_40 = arith.constant 0.000000e+00 : f32
      %92 = vector.broadcast %cst_40 : f32 to vector<8x1xf32>
      %93 = arith.cmpf oeq, %91, %92 : vector<8x1xf32>
      %cst_41 = arith.constant 9.99999997E-7 : f32
      %94 = vector.broadcast %cst_41 : f32 to vector<8x1xf32>
      %95 = arith.select %93, %94, %91 : vector<8x1xi1>, vector<8x1xf32>
      %96 = arith.divf %90, %95 : vector<8x1xf32>
      %97 = vector.broadcast %77 : vector<8x1xf32> to vector<8x8xf32>
      %98 = arith.subf %56, %97 : vector<8x8xf32>
      %99 = vector.broadcast %96 : vector<8x1xf32> to vector<8x8xf32>
      %100 = arith.mulf %99, %98 : vector<8x8xf32>
      %101 = vector.broadcast %76 : vector<8x1xf32> to vector<8x8xf32>
      %102 = arith.addf %101, %100 : vector<8x8xf32>
      %103 = arith.cmpf oge, %75, %102 : vector<8x8xf32>
      %104 = arith.subf %82, %78 : vector<8x1xf32>
      %105 = arith.subf %83, %79 : vector<8x1xf32>
      %cst_42 = arith.constant 0.000000e+00 : f32
      %106 = vector.broadcast %cst_42 : f32 to vector<8x1xf32>
      %107 = arith.cmpf oeq, %105, %106 : vector<8x1xf32>
      %cst_43 = arith.constant 9.99999997E-7 : f32
      %108 = vector.broadcast %cst_43 : f32 to vector<8x1xf32>
      %109 = arith.select %107, %108, %105 : vector<8x1xi1>, vector<8x1xf32>
      %110 = arith.divf %104, %109 : vector<8x1xf32>
      %111 = vector.broadcast %79 : vector<8x1xf32> to vector<8x8xf32>
      %112 = arith.subf %56, %111 : vector<8x8xf32>
      %113 = vector.broadcast %110 : vector<8x1xf32> to vector<8x8xf32>
      %114 = arith.mulf %113, %112 : vector<8x8xf32>
      %115 = vector.broadcast %78 : vector<8x1xf32> to vector<8x8xf32>
      %116 = arith.addf %115, %114 : vector<8x8xf32>
      %117 = arith.cmpf ole, %75, %116 : vector<8x8xf32>
      %118 = arith.andi %86, %89 : vector<8x8xi1>
      %119 = arith.andi %118, %103 : vector<8x8xi1>
      %120 = arith.andi %119, %117 : vector<8x8xi1>
      %121 = vector.extract_strided_slice %72 {offsets = [0, 4], sizes = [8, 1], strides = [1, 1]} : vector<8x12xf32> to vector<8x1xf32>
      %122 = vector.extract_strided_slice %72 {offsets = [0, 5], sizes = [8, 1], strides = [1, 1]} : vector<8x12xf32> to vector<8x1xf32>
      %123 = vector.extract_strided_slice %72 {offsets = [0, 6], sizes = [8, 1], strides = [1, 1]} : vector<8x12xf32> to vector<8x1xf32>
      %124 = vector.extract_strided_slice %72 {offsets = [0, 7], sizes = [8, 1], strides = [1, 1]} : vector<8x12xf32> to vector<8x1xf32>
      %125 = vector.extract_strided_slice %72 {offsets = [0, 8], sizes = [8, 1], strides = [1, 1]} : vector<8x12xf32> to vector<8x1xf32>
      %126 = vector.extract_strided_slice %72 {offsets = [0, 9], sizes = [8, 1], strides = [1, 1]} : vector<8x12xf32> to vector<8x1xf32>
      %127 = vector.extract_strided_slice %72 {offsets = [0, 10], sizes = [8, 1], strides = [1, 1]} : vector<8x12xf32> to vector<8x1xf32>
      %128 = vector.extract_strided_slice %72 {offsets = [0, 11], sizes = [8, 1], strides = [1, 1]} : vector<8x12xf32> to vector<8x1xf32>
      %129 = arith.minimumf %122, %124 : vector<8x1xf32>
      %130 = vector.broadcast %129 : vector<8x1xf32> to vector<8x8xf32>
      %131 = arith.cmpf oge, %56, %130 : vector<8x8xf32>
      %132 = arith.maximumf %126, %128 : vector<8x1xf32>
      %133 = vector.broadcast %132 : vector<8x1xf32> to vector<8x8xf32>
      %134 = arith.cmpf ole, %56, %133 : vector<8x8xf32>
      %135 = arith.subf %125, %121 : vector<8x1xf32>
      %136 = arith.subf %126, %122 : vector<8x1xf32>
      %cst_44 = arith.constant 0.000000e+00 : f32
      %137 = vector.broadcast %cst_44 : f32 to vector<8x1xf32>
      %138 = arith.cmpf oeq, %136, %137 : vector<8x1xf32>
      %cst_45 = arith.constant 9.99999997E-7 : f32
      %139 = vector.broadcast %cst_45 : f32 to vector<8x1xf32>
      %140 = arith.select %138, %139, %136 : vector<8x1xi1>, vector<8x1xf32>
      %141 = arith.divf %135, %140 : vector<8x1xf32>
      %142 = vector.broadcast %122 : vector<8x1xf32> to vector<8x8xf32>
      %143 = arith.subf %56, %142 : vector<8x8xf32>
      %144 = vector.broadcast %141 : vector<8x1xf32> to vector<8x8xf32>
      %145 = arith.mulf %144, %143 : vector<8x8xf32>
      %146 = vector.broadcast %121 : vector<8x1xf32> to vector<8x8xf32>
      %147 = arith.addf %146, %145 : vector<8x8xf32>
      %148 = arith.cmpf oge, %75, %147 : vector<8x8xf32>
      %149 = arith.subf %127, %123 : vector<8x1xf32>
      %150 = arith.subf %128, %124 : vector<8x1xf32>
      %cst_46 = arith.constant 0.000000e+00 : f32
      %151 = vector.broadcast %cst_46 : f32 to vector<8x1xf32>
      %152 = arith.cmpf oeq, %150, %151 : vector<8x1xf32>
      %cst_47 = arith.constant 9.99999997E-7 : f32
      %153 = vector.broadcast %cst_47 : f32 to vector<8x1xf32>
      %154 = arith.select %152, %153, %150 : vector<8x1xi1>, vector<8x1xf32>
      %155 = arith.divf %149, %154 : vector<8x1xf32>
      %156 = vector.broadcast %124 : vector<8x1xf32> to vector<8x8xf32>
      %157 = arith.subf %56, %156 : vector<8x8xf32>
      %158 = vector.broadcast %155 : vector<8x1xf32> to vector<8x8xf32>
      %159 = arith.mulf %158, %157 : vector<8x8xf32>
      %160 = vector.broadcast %123 : vector<8x1xf32> to vector<8x8xf32>
      %161 = arith.addf %160, %159 : vector<8x8xf32>
      %162 = arith.cmpf ole, %75, %161 : vector<8x8xf32>
      %163 = arith.andi %131, %134 : vector<8x8xi1>
      %164 = arith.andi %163, %148 : vector<8x8xi1>
      %165 = arith.andi %164, %162 : vector<8x8xi1>
      %166 = arith.andi %58, %44 : vector<8x8xi1>
      %cst_48 = arith.constant dense<true> : vector<8x8xi1>
      %167 = arith.xori %71, %cst_48 : vector<8x8xi1>
      %168 = arith.andi %166, %167 : vector<8x8xi1>
      %169 = arith.andi %168, %120 : vector<8x8xi1>
      %cst_49 = arith.constant dense<true> : vector<8x8xi1>
      %170 = arith.xori %120, %cst_49 : vector<8x8xi1>
      %171 = arith.andi %168, %170 : vector<8x8xi1>
      %172 = arith.andi %171, %165 : vector<8x8xi1>
      %173 = vector.extract_strided_slice %72 {offsets = [0, 1], sizes = [8, 1], strides = [1, 1]} : vector<8x12xf32> to vector<8x1xf32>
      %174 = vector.extract_strided_slice %72 {offsets = [0, 3], sizes = [8, 1], strides = [1, 1]} : vector<8x12xf32> to vector<8x1xf32>
      %175 = vector.extract_strided_slice %72 {offsets = [0, 5], sizes = [8, 1], strides = [1, 1]} : vector<8x12xf32> to vector<8x1xf32>
      %176 = vector.extract_strided_slice %72 {offsets = [0, 7], sizes = [8, 1], strides = [1, 1]} : vector<8x12xf32> to vector<8x1xf32>
      %177 = vector.extract_strided_slice %72 {offsets = [0, 9], sizes = [8, 1], strides = [1, 1]} : vector<8x12xf32> to vector<8x1xf32>
      %178 = vector.extract_strided_slice %72 {offsets = [0, 11], sizes = [8, 1], strides = [1, 1]} : vector<8x12xf32> to vector<8x1xf32>
      %179 = arith.addf %175, %176 : vector<8x1xf32>
      %cst_50 = arith.constant 5.000000e-01 : f32
      %180 = vector.broadcast %cst_50 : f32 to vector<8x1xf32>
      %181 = arith.mulf %180, %179 : vector<8x1xf32>
      %182 = arith.addf %173, %174 : vector<8x1xf32>
      %cst_51 = arith.constant 5.000000e-01 : f32
      %183 = vector.broadcast %cst_51 : f32 to vector<8x1xf32>
      %184 = arith.mulf %183, %182 : vector<8x1xf32>
      %185 = arith.addf %184, %181 : vector<8x1xf32>
      %cst_52 = arith.constant 5.000000e-01 : f32
      %186 = vector.broadcast %cst_52 : f32 to vector<8x1xf32>
      %187 = arith.mulf %186, %185 : vector<8x1xf32>
      %188 = arith.addf %177, %178 : vector<8x1xf32>
      %cst_53 = arith.constant 5.000000e-01 : f32
      %189 = vector.broadcast %cst_53 : f32 to vector<8x1xf32>
      %190 = arith.mulf %189, %188 : vector<8x1xf32>
      %191 = arith.addf %190, %181 : vector<8x1xf32>
      %cst_54 = arith.constant 5.000000e-01 : f32
      %192 = vector.broadcast %cst_54 : f32 to vector<8x1xf32>
      %193 = arith.mulf %192, %191 : vector<8x1xf32>
      %194 = tpu.iota {dimensions = array<i32: 1>} : vector<8x8xi32>
      %195 = vector.broadcast %187 : vector<8x1xf32> to vector<8x8xf32>
      %196 = arith.subf %56, %195 : vector<8x8xf32>
      %197 = math.absf %196 : vector<8x8xf32>
      %cst_55 = arith.constant 0x7F800000 : f32
      %198 = vector.broadcast %cst_55 : f32 to vector<8x8xf32>
      %199 = arith.select %169, %197, %198 : vector<8x8xi1>, vector<8x8xf32>
      %cst_56 = arith.constant dense<0x7F800000> : vector<8xf32>
      %200 = vector.multi_reduction <minimumf>, %199, %cst_56 [1] : vector<8x8xf32> to vector<8xf32>
      %201 = vector.shape_cast %200 : vector<8xf32> to vector<8x1xf32>
      %202 = vector.broadcast %201 : vector<8x1xf32> to vector<8x8xf32>
      %203 = arith.cmpf ole, %199, %202 : vector<8x8xf32>
      %204 = arith.andi %169, %203 : vector<8x8xi1>
      %c8_i32 = arith.constant 8 : i32
      %205 = vector.broadcast %c8_i32 : i32 to vector<8x8xi32>
      %206 = arith.select %204, %194, %205 : vector<8x8xi1>, vector<8x8xi32>
      %cst_57 = arith.constant dense<2147483647> : vector<8xi32>
      %207 = vector.multi_reduction <minsi>, %206, %cst_57 [1] : vector<8x8xi32> to vector<8xi32>
      %208 = vector.shape_cast %207 : vector<8xi32> to vector<8x1xi32>
      %209 = vector.broadcast %208 : vector<8x1xi32> to vector<8x8xi32>
      %210 = arith.cmpi eq, %194, %209 : vector<8x8xi32>
      %211 = arith.extui %210 : vector<8x8xi1> to vector<8x8xi32>
      %212 = arith.sitofp %211 : vector<8x8xi32> to vector<8x8xf32>
      %213 = arith.extui %169 : vector<8x8xi1> to vector<8x8xi32>
      %214 = arith.sitofp %213 : vector<8x8xi32> to vector<8x8xf32>
      %cst_58 = arith.constant dense<0.000000e+00> : vector<8xf32>
      %215 = vector.multi_reduction <add>, %214, %cst_58 [1] : vector<8x8xf32> to vector<8xf32>
      %216 = vector.shape_cast %215 : vector<8xf32> to vector<8x1xf32>
      %cst_59 = arith.constant 0.000000e+00 : f32
      %217 = vector.broadcast %cst_59 : f32 to vector<8x1xf32>
      %218 = arith.cmpf ogt, %216, %217 : vector<8x1xf32>
      %219 = arith.mulf %47, %212 : vector<8x8xf32>
      %cst_60 = arith.constant dense<0.000000e+00> : vector<8xf32>
      %220 = vector.multi_reduction <add>, %219, %cst_60 [1] : vector<8x8xf32> to vector<8xf32>
      %221 = vector.shape_cast %220 : vector<8xf32> to vector<8x1xf32>
      %222 = arith.mulf %53, %212 : vector<8x8xf32>
      %cst_61 = arith.constant dense<0.000000e+00> : vector<8xf32>
      %223 = vector.multi_reduction <add>, %222, %cst_61 [1] : vector<8x8xf32> to vector<8xf32>
      %224 = vector.shape_cast %223 : vector<8xf32> to vector<8x1xf32>
      %225 = arith.mulf %50, %212 : vector<8x8xf32>
      %cst_62 = arith.constant dense<0.000000e+00> : vector<8xf32>
      %226 = vector.multi_reduction <add>, %225, %cst_62 [1] : vector<8x8xf32> to vector<8xf32>
      %227 = vector.shape_cast %226 : vector<8xf32> to vector<8x1xf32>
      %228 = arith.mulf %56, %212 : vector<8x8xf32>
      %cst_63 = arith.constant dense<0.000000e+00> : vector<8xf32>
      %229 = vector.multi_reduction <add>, %228, %cst_63 [1] : vector<8x8xf32> to vector<8xf32>
      %230 = vector.shape_cast %229 : vector<8xf32> to vector<8x1xf32>
      %231 = tpu.concatenate %221, %224, %227, %230 in 1 : vector<8x1xf32>, vector<8x1xf32>, vector<8x1xf32>, vector<8x1xf32> -> vector<8x4xf32>
      %cst_64 = arith.constant 0.000000e+00 : f32
      %232 = vector.shape_cast %218 : vector<8x1xi1> to vector<8x1xi1>
      %233 = vector.broadcast %232 : vector<8x1xi1> to vector<8x4xi1>
      %234 = vector.broadcast %cst_64 : f32 to vector<8x4xf32>
      %235 = arith.select %233, %231, %234 : vector<8x4xi1>, vector<8x4xf32>
      %236 = vector.broadcast %193 : vector<8x1xf32> to vector<8x8xf32>
      %237 = arith.subf %56, %236 : vector<8x8xf32>
      %238 = math.absf %237 : vector<8x8xf32>
      %cst_65 = arith.constant 0x7F800000 : f32
      %239 = vector.broadcast %cst_65 : f32 to vector<8x8xf32>
      %240 = arith.select %172, %238, %239 : vector<8x8xi1>, vector<8x8xf32>
      %cst_66 = arith.constant dense<0x7F800000> : vector<8xf32>
      %241 = vector.multi_reduction <minimumf>, %240, %cst_66 [1] : vector<8x8xf32> to vector<8xf32>
      %242 = vector.shape_cast %241 : vector<8xf32> to vector<8x1xf32>
      %243 = vector.broadcast %242 : vector<8x1xf32> to vector<8x8xf32>
      %244 = arith.cmpf ole, %240, %243 : vector<8x8xf32>
      %245 = arith.andi %172, %244 : vector<8x8xi1>
      %c8_i32_67 = arith.constant 8 : i32
      %246 = vector.broadcast %c8_i32_67 : i32 to vector<8x8xi32>
      %247 = arith.select %245, %194, %246 : vector<8x8xi1>, vector<8x8xi32>
      %cst_68 = arith.constant dense<2147483647> : vector<8xi32>
      %248 = vector.multi_reduction <minsi>, %247, %cst_68 [1] : vector<8x8xi32> to vector<8xi32>
      %249 = vector.shape_cast %248 : vector<8xi32> to vector<8x1xi32>
      %250 = vector.broadcast %249 : vector<8x1xi32> to vector<8x8xi32>
      %251 = arith.cmpi eq, %194, %250 : vector<8x8xi32>
      %252 = arith.extui %251 : vector<8x8xi1> to vector<8x8xi32>
      %253 = arith.sitofp %252 : vector<8x8xi32> to vector<8x8xf32>
      %254 = arith.extui %172 : vector<8x8xi1> to vector<8x8xi32>
      %255 = arith.sitofp %254 : vector<8x8xi32> to vector<8x8xf32>
      %cst_69 = arith.constant dense<0.000000e+00> : vector<8xf32>
      %256 = vector.multi_reduction <add>, %255, %cst_69 [1] : vector<8x8xf32> to vector<8xf32>
      %257 = vector.shape_cast %256 : vector<8xf32> to vector<8x1xf32>
      %cst_70 = arith.constant 0.000000e+00 : f32
      %258 = vector.broadcast %cst_70 : f32 to vector<8x1xf32>
      %259 = arith.cmpf ogt, %257, %258 : vector<8x1xf32>
      %260 = arith.mulf %47, %253 : vector<8x8xf32>
      %cst_71 = arith.constant dense<0.000000e+00> : vector<8xf32>
      %261 = vector.multi_reduction <add>, %260, %cst_71 [1] : vector<8x8xf32> to vector<8xf32>
      %262 = vector.shape_cast %261 : vector<8xf32> to vector<8x1xf32>
      %263 = arith.mulf %53, %253 : vector<8x8xf32>
      %cst_72 = arith.constant dense<0.000000e+00> : vector<8xf32>
      %264 = vector.multi_reduction <add>, %263, %cst_72 [1] : vector<8x8xf32> to vector<8xf32>
      %265 = vector.shape_cast %264 : vector<8xf32> to vector<8x1xf32>
      %266 = arith.mulf %50, %253 : vector<8x8xf32>
      %cst_73 = arith.constant dense<0.000000e+00> : vector<8xf32>
      %267 = vector.multi_reduction <add>, %266, %cst_73 [1] : vector<8x8xf32> to vector<8xf32>
      %268 = vector.shape_cast %267 : vector<8xf32> to vector<8x1xf32>
      %269 = arith.mulf %56, %253 : vector<8x8xf32>
      %cst_74 = arith.constant dense<0.000000e+00> : vector<8xf32>
      %270 = vector.multi_reduction <add>, %269, %cst_74 [1] : vector<8x8xf32> to vector<8xf32>
      %271 = vector.shape_cast %270 : vector<8xf32> to vector<8x1xf32>
      %272 = tpu.concatenate %262, %265, %268, %271 in 1 : vector<8x1xf32>, vector<8x1xf32>, vector<8x1xf32>, vector<8x1xf32> -> vector<8x4xf32>
      %cst_75 = arith.constant 0.000000e+00 : f32
      %273 = vector.shape_cast %259 : vector<8x1xi1> to vector<8x1xi1>
      %274 = vector.broadcast %273 : vector<8x1xi1> to vector<8x4xi1>
      %275 = vector.broadcast %cst_75 : f32 to vector<8x4xf32>
      %276 = arith.select %274, %272, %275 : vector<8x4xi1>, vector<8x4xf32>
      %cst_76 = arith.constant 0.000000e+00 : f32
      %277 = vector.broadcast %cst_76 : f32 to vector<8x118xf32>
      %278 = arith.extui %259 : vector<8x1xi1> to vector<8x1xi32>
      %279 = arith.sitofp %278 : vector<8x1xi32> to vector<8x1xf32>
      %280 = arith.extui %218 : vector<8x1xi1> to vector<8x1xi32>
      %281 = arith.sitofp %280 : vector<8x1xi32> to vector<8x1xf32>
      %282 = tpu.concatenate %276, %235, %279, %281, %277 in 1 : vector<8x4xf32>, vector<8x4xf32>, vector<8x1xf32>, vector<8x1xf32>, vector<8x118xf32> -> vector<8x128xf32>
      %c0_77 = arith.constant 0 : index
      %c0_78 = arith.constant 0 : index
      %283 = vector.load %arg7[%c0_77, %c0_78] : memref<8x128xf32, #tpu.memory_space<vmem>>, vector<8x128xf32>
      tpu.vector_store %arg7[%c0_77, %c0_78], %282 {strides = array<i32>} : memref<8x128xf32, #tpu.memory_space<vmem>>, vector<8x128xf32>,
    } else {
    }
    return
  }
  func.func @transform_0(%arg0: i32, %arg1: i32) -> (i32, i32, i32) {
    %c0_i32 = arith.constant 0 : i32
    %c0_i32_0 = arith.constant 0 : i32
    return %arg0, %c0_i32, %arg1 : i32, i32, i32
  }
  func.func @transform_1(%arg0: i32, %arg1: i32) -> (i32, i32) {
    %c0_i32 = arith.constant 0 : i32
    %c0_i32_0 = arith.constant 0 : i32
    return %arg0, %c0_i32 : i32, i32
  }
  func.func @transform_2(%arg0: i32, %arg1: i32) -> (i32, i32) {
    %c0_i32 = arith.constant 0 : i32
    %c0_i32_0 = arith.constant 0 : i32
    %c0_i32_1 = arith.constant 0 : i32
    return %c0_i32, %c0_i32_0 : i32, i32
  }
  func.func @transform_3(%arg0: i32, %arg1: i32) -> (i32, i32) {
    %c0_i32 = arith.constant 0 : i32
    %c0_i32_0 = arith.constant 0 : i32
    %c0_i32_1 = arith.constant 0 : i32
    return %c0_i32, %c0_i32_0 : i32, i32
  }
  func.func @transform_4(%arg0: i32, %arg1: i32) -> (i32, i32) {
    %c0_i32 = arith.constant 0 : i32
    %c0_i32_0 = arith.constant 0 : i32
    %c0_i32_1 = arith.constant 0 : i32
    return %c0_i32, %c0_i32_0 : i32, i32
  }
  func.func @transform_5(%arg0: i32, %arg1: i32) -> (i32, i32) {
    %c0_i32 = arith.constant 0 : i32
    %c0_i32_0 = arith.constant 0 : i32
    return %arg0, %c0_i32 : i32, i32
  }
}

</mosaic_0001>

<bundles_post_ra>
// kernel: tpu_custom_call.1
= control target key start
LH: loop header
LB: loop body
LE: loop exit
PB: predicated region body
PF: predicated region fallthrough
CT: control target
= control target key end

     0   :  { %10 = vsyncpa [#allocation4], 0  ;;  %s1711_s0 = inlined_call_operand.vmem [shape: f32[16,3,256], index: 0, kind: input, shape index: {}]   ;;  %s1712_s1 = inlined_call_operand.vmem [shape: f32[16,12], index: 1, kind: input, shape index: {}]   ;;  %s1713_s2 = inlined_call_operand.vmem [shape: f32[3,32], index: 2, kind: input, shape index: {}]   ;;  %s1714_s3 = inlined_call_operand.vmem [shape: f32[32,48], index: 3, kind: input, shape index: {}]   ;;  %s1715_s4 = inlined_call_operand.vmem [shape: f32[1,48], index: 4, kind: input, shape index: {}]   ;;  %s1716_s5 = inlined_call_operand.hbm [shape: f32[16,128], index: 5, kind: output, shape index: {}]  }
   0x1   :  { %12 = vsyncpa [#allocation4 + $0x1], 0  ;;  %s1382_s18 = smov 0   ;;  %s1384_s19 = smov 0  }
   0x2   :  { %s1386_s20 = smov 0   ;;  %s1388_s21 = smov 0  }
   0x3   :  { %s1390_s22 = smov 0   ;;  %s1392_s23 = smov 0  }
   0x4 LB: > { %s1080_s24 = sadd.s32 4294967295, %s1324_s23   ;;  %s1081_s25 = sadd.s32 4294967294, %s1324_s23   ;;  %s1324_s23 = sphi %s1392_s23, %s18_s23   ;;  %s1320_s22 = sphi %s1390_s22, %s1731_s22   ;;  %s1316_s21 = sphi %s1388_s21, %s1730_s21   ;;  %s1312_s20 = sphi %s1386_s20, %s1729_s20   ;;  %s1308_s19 = sphi %s1384_s19, %s1728_s19   ;;  %s1304_s18 = sphi %s1382_s18, %s1727_s18  }
   0x5   : > { %s30_s26 = sadd.s32 1, %s1320_s22  ;;  %s154_s27 = sadd.s32 1, %s1312_s20 }
   0x6   : > { %p32_p0 = scmp.ge.s32.totalorder %s30_s26, 2  ;;  %p164_p1 = scmp.ne.s32.totalorder %s1312_s20, %s1308_s19 }
   0x7   : > { %p165_p2 = scmp.eq.s32.totalorder %s1080_s24, 1  ;;  %p170_p3 = scmp.ne.s32.totalorder %s1308_s19, %s1304_s18 }
   0x8   : > { %s1733_s26 = smov (%p32_p0, %s30_s26), 0  ;;  %p171_p5 = scmp.eq.s32.totalorder %s1081_s25, 1 }
   0x9   : > { %p1422_p4 = por %p165_p2, %p164_p1  ;;  %s151_s29 = ssub.s32 %s1320_s22, %s1733_s26 }
   0xa   : > { %p1084_p6 = scmp.ge.s32.totalorder %s1324_s23, 1  ;;  %p152_p7 = scmp.eq.s32.totalorder %s151_s29, 0 }
   0xb   : > { %p1429_p8 = por %p171_p5, %p170_p3  ;;  %p220_p9 = scmp.lt.s32.totalorder %s1324_s23, 3 }
   0xc   : > { %s1435_s6 = scalar_select %p152_p7, %s1312_s20, %s154_s27  }
   0xd   : > { %p221_p10 = pnand %p1084_p6, %p220_p9 }
   0xe   : > { %s1086_s7 = sshll.u32 (!%p221_p10), %s1316_s21, 3  ;;  %vm312_vm0 = vcmask (!%p221_p10), 1042432   ;;  %vm277_vm1 = vcmask (!%p221_p10), 23552   ;;  %v1326_v40 = vmov (!%p221_p10), 0.0   ;;  %v418_v41 = vld [vmem:[%s1713_s2] sm:$0x7] (!%p221_p10)  ;;  %v361_v47 = vlaneseq (!%p221_p10) }
   0xf   : > { %224 = sbr.rel (%p221_p10) target bundleno = 2125 (0x84d), region = 40  ;;  %p259_p11 = scmp.lt.s32.totalorder (!%p221_p10), %s1086_s7, 15  ;;  %1113 = vmatprep.subr.mxu0 (!%p221_p10), %v1326_v40  ;;  %278 = vst.msk [vmem:[#allocation2] sm:$0xff] (!%p221_p10), %vm277_vm1, %v1326_v40  ;;  %vm1327_vm2 = vmmov (!%p221_p10), 0   ;;  %v496_v42 = vld [vmem:[%s1714_s3] sm:$0xff] (!%p221_p10)  ;;  %v497_v43 = vld [vmem:[%s1714_s3 + $0x8] sm:$0xff] (!%p221_p10) }
  0x10   : > { %1114 = vmatpush3.msk.msra.mxu0 (!%p221_p10), %vm312_vm0, %v418_v41  ;;  %1115 = vmatprep.mubr.msk.f32.mxu0 (!%p221_p10), %vm1327_vm2, %v1326_v40  ;;  %p269_p12 = scmp.lt.s32.totalorder (!%p221_p10), %s1316_s21, 1  ;;  %v1328_v44 = vmov (!%p221_p10), 0.0|0.0   ;;  %v1130_v45 = vpack.c.bf16 (!%p221_p10), %v497_v43, %v496_v42  ;;  %v1481_v48 = vand.u32 (!%p221_p10), 127, %v361_v47  ;;  %v364_v49 = vshrl.u32 (!%p221_p10), %v361_v47, 7  ;;  %s1330_s9 = smov (!%p221_p10), 127  }
  0x11   : > { %1126 = vmatprep.mubr.msk.f32.mxu1 (!%p221_p10), %vm1327_vm2, %v1326_v40  ;;  %1129 = vmatprep.subr.bf16.mxu1 (!%p221_p10), %v1328_v44  ;;  %vm395_vm3 = vcmask (!%p221_p10), 1041409   ;;  %vm397_vm4 = vcmask (!%p221_p10), 1042434   ;;  %vm399_vm5 = vcmask (!%p221_p10), 1043459   ;;  %vm401_vm6 = vcmask (!%p221_p10), 1044484   ;;  %s1332_s14 = smov (!%p221_p10), 126   ;;  %s1340_s17 = smov (!%p221_p10), 112  }
  0x12   : > { %1131 = vmatpush3.bf16.msra.mxu1 (!%p221_p10), %v1130_v45  ;;  %v365_v52 = vsub.s32 (!%p221_p10), %v1481_v48, %v364_v49  ;;  %vm403_vm7 = vcmask (!%p221_p10), 1045509   ;;  %vm405_vm8 = vcmask (!%p221_p10), 1046534   ;;  %vm407_vm9 = vcmask (!%p221_p10), 1047559   ;;  %s1346_s27 = smov (!%p221_p10), 8   ;;  %s1348_s29 = smov (!%p221_p10), 24  }
  0x13   : > { %1132 = vmatprep.subr.bf16.mxu1 (!%p221_p10), %v1328_v44  ;;  %vm507_vm11 = vcmask (!%p221_p10), 261120   ;;  %v1341_v45 = vmov (!%p221_p10), 7   ;;  %v1342_v47 = vmov (!%p221_p10), 10   ;;  %s254_s10 = sand.u32 (!%p221_p10), 1, %s1308_s19  }
  0x16   : > { %s1735_s7 = smov (!%p259_p11, %s1086_s7), 15 }
  0x17   : > { %s1105_s8 = sshll.u32 %s1735_s7, 3 }
  0x18   : > { %s266_s11 = scalar_lea.vmem %s1711_s0, %s1105_s8  ;;  %s1329_s8 = smov 4  }
  0x19   : > { %v279_v0 = vld [vmem:[%s266_s11] sm:$0x77]  ;;  %v281_v1 = vld [vmem:[%s266_s11 + $0x10] sm:$0x77]  ;;  %v280_v2 = vld [vmem:[%s266_s11 + $0x8] sm:$0x77] }
  0x1a   : > { %v296_v3 = vcombine.high %v279_v0, %v279_v0  ;;  %v313_v4 = vsel %vm312_vm0, %v279_v0, 0.0  ;;  %v298_v5 = vcombine.high %v281_v1, %v281_v1  ;;  %v323_v6 = vsel %vm312_vm0, %v281_v1, 0.0  ;;  %v282_v7 = vld [vmem:[%s266_s11 + $0x18] sm:$0x77]  ;;  %v283_v8 = vld [vmem:[%s266_s11 + $0x20] sm:$0x77] }
  0x1b   : > { %v297_v9 = vcombine.high %v280_v2, %v280_v2  ;;  %v318_v10 = vsel %vm312_vm0, %v280_v2, 0.0  ;;  %v299_v11 = vcombine.high %v282_v7, %v282_v7  ;;  %v284_v12 = vld [vmem:[%s266_s11 + $0x28] sm:$0x77]  ;;  %v328_v15 = vsel %vm312_vm0, %v282_v7, 0.0  ;;  %v285_v21 = vld [vmem:[%s266_s11 + $0x30] sm:$0x77] }
  0x1c   : > { %v314_v13 = vsel %vm312_vm0, %v296_v3, 0.0  ;;  %v324_v14 = vsel %vm312_vm0, %v298_v5, 0.0  ;;  %v300_v16 = vcombine.high %v283_v8, %v283_v8  ;;  %v286_v22 = vld [vmem:[%s266_s11 + $0x38] sm:$0x77]  ;;  %v301_v23 = vcombine.high %v284_v12, %v284_v12  ;;  %s270_s24 = scalar_select %p269_p12, %s1316_s21, 1 }
  0x1d   : > { %v315_v17 = vadd.f32 %v314_v13, %v313_v4  ;;  %v325_v18 = vadd.f32 %v324_v14, %v323_v6  ;;  %v319_v19 = vsel %vm312_vm0, %v297_v9, 0.0  ;;  %v329_v20 = vsel %vm312_vm0, %v299_v11, 0.0  ;;  %s1085_s11 = sshll.u32 %s254_s10, 3 }
  0x1e   : > { %v320_v24 = vadd.f32 %v319_v19, %v318_v10  ;;  %v330_v25 = vadd.f32 %v329_v20, %v328_v15  ;;  %v333_v26 = vsel %vm312_vm0, %v283_v8, 0.0  ;;  %v334_v27 = vsel %vm312_vm0, %v300_v16, 0.0  ;;  %s1089_s25 = sshll.u32 %s270_s24, 3  ;;  %v287_v8 = vld [vmem:[#allocation2] sm:$0xff]  ;;  %s1343_s24 = smov 124  }
  0x1f   : > { %316 = vadd.xlane.f32.xlu0 %v315_v17  ;;  %326 = vadd.xlane.f32.xlu1 %v325_v18  ;;  %v338_v28 = vsel %vm312_vm0, %v284_v12, 0.0  ;;  %v339_v29 = vsel %vm312_vm0, %v301_v23, 0.0  ;;  %v302_v30 = vcombine.high %v285_v21, %v285_v21  ;;  %v303_v31 = vcombine.high %v286_v22, %v286_v22  ;;  %s272_s7 = scalar_lea.vmem %s1712_s1, %s1089_s25  ;;  %v498_v17 = vld [vmem:[%s1714_s3 + $0x10] sm:$0xff]  ;;  %v499_v18 = vld [vmem:[%s1714_s3 + $0x18] sm:$0xff]  ;;  %s1344_s25 = smov 120  }
  0x20   : > { %v335_v32 = vadd.f32 %v334_v27, %v333_v26  ;;  %v340_v33 = vadd.f32 %v339_v29, %v338_v28  ;;  %v343_v34 = vsel %vm312_vm0, %v285_v21, 0.0  ;;  %v348_v36 = vsel %vm312_vm0, %v286_v22, 0.0  ;;  %v1477_v46 = vld [vmem:[%s272_s7] sm:$0xff]  ;;  %s1349_s7 = smov 32   ;;  %s256_s12 = scalar_lea.vmem [#allocation3], %s1085_s11 }
  0x21   : > { %v344_v35 = vsel %vm312_vm0, %v302_v30, 0.0  ;;  %v349_v37 = vsel %vm312_vm0, %v303_v31, 0.0  ;;  %v1133_v19 = vpack.c.bf16 %v499_v18, %v498_v17  ;;  %v1331_v20 = vmov 1   ;;  %s995_s13 = sshll.u32 %s256_s12, 4  ;;  %s1666_s13 = int_to_ptr.vmem [resolvable:$true] %s995_s13 }
  0x22   : > { %v345_v38 = vadd.f32 %v344_v35, %v343_v34  ;;  %v350_v39 = vadd.f32 %v349_v37, %v348_v36  ;;  %1215 = vset.pattern.permute.xlu1 %v1331_v20  ;;  %v1333_v21 = vmov 6   ;;  %v1334_v22 = vmov 3   ;;  %v1092_v34 = vld [vmem:[%s1715_s4] ss:$0 sm:$0xff] }
  0x23   : > { %321 = vadd.xlane.f32.xlu0 %v320_v24  ;;  %331 = vadd.xlane.f32.xlu1 %v330_v25  ;;  %v1335_v23 = vmov 0   ;;  %v1336_v24 = vmov 4   ;;  %v1337_v28 = vmov 2   ;;  %v1338_v29 = vmov 8  }
  0x24   : > { %1134 = vmatpush3.bf16.msra.mxu1 %v1133_v19  ;;  %1219 = vset.pattern.permute.xlu0 %v1333_v21 }
  0x27   : > { %336 = vadd.xlane.f32.xlu0 %v335_v32  ;;  %341 = vadd.xlane.f32.xlu1 %v340_v33  ;;  %v1339_v33 = vmov 5  }
  0x2b   : > { %346 = vadd.xlane.f32.xlu0 %v345_v38  ;;  %351 = vadd.xlane.f32.xlu1 %v350_v39 }
  0x41   : > { %636 = vrot.lane.b32.xlu0 %v1477_v46, %s1329_s8 }
  0x45   : > { %619 = vrot.lane.b32.xlu0 %v1477_v46, %s1332_s14 }
  0xac   : > { %v317_v50 = vpop.xlane.xlu0 %316  ;;  %v327_v51 = vpop.xlane.xlu1 %326 }
  0xad   : > { %v366_v55 = vrot.slane %v317_v50, %v365_v52  ;;  %v374_v58 = vrot.slane %v327_v51, %v365_v52 }
  0xb0   : > { %v322_v53 = vpop.xlane.xlu0 %321  ;;  %v332_v54 = vpop.xlane.xlu1 %331 }
  0xb1   : > { %v370_v56 = vrot.slane %v322_v53, %v365_v52  ;;  %v378_v57 = vrot.slane %v332_v54, %v365_v52 }
  0xb3   : > { %v396_v59 = vsel %vm395_vm3, %v370_v56, %v366_v55 }
  0xb4   : > { %v398_v60 = vsel %vm397_vm4, %v374_v58, %v396_v59  ;;  %v337_v61 = vpop.xlane.xlu0 %336  ;;  %v342_v62 = vpop.xlane.xlu1 %341 }
  0xb5   : > { %v400_v63 = vsel %vm399_vm5, %v378_v57, %v398_v60  ;;  %v382_v0 = vrot.slane %v337_v61, %v365_v52  ;;  %v386_v1 = vrot.slane %v342_v62, %v365_v52 }
  0xb7   : > { %v402_v2 = vsel %vm401_vm6, %v382_v0, %v400_v63 }
  0xb8   : > { %v347_v3 = vpop.xlane.xlu0 %346  ;;  %v352_v4 = vpop.xlane.xlu1 %351  ;;  %v404_v7 = vsel %vm403_vm7, %v386_v1, %v402_v2 }
  0xb9   : > { %v390_v5 = vrot.slane %v347_v3, %v365_v52  ;;  %v394_v6 = vrot.slane %v352_v4, %v365_v52 }
  0xbb   : > { %v406_v9 = vsel %vm405_vm8, %v390_v5, %v404_v7 }
  0xbc   : > { %v408_v10 = vsel %vm407_vm9, %v394_v6, %v406_v9  ;;  %v637_v12 = vpop.permute.xlu0 %636  ;;  %v1345_v9 = vmov 9   ;;  %vm1347_vm9 = vmmov 1  }
  0xbd   : > { %v410_v11 = vadd.f32 %v408_v10, %v287_v8  ;;  %v639_v13 = vsub.f32 %v1477_v46, %v637_v12 }
  0xbf   : > { %412 = vst.msk [vmem:[#allocation2] sm:$0xff] %vm277_vm1, %v410_v11  ;;  %vm640_vm10 = vcmp.eq.f32.partialorder %v639_v13, 0.0 }
  0xc0   : > { %v641_v15 = vsel %vm640_vm10, 1e-06, %v639_v13  ;;  %v620_v49 = vpop.permute.xlu0 %619 }
  0xc1   : > { %643 = vrot.lane.b32.xlu1 %v641_v15, %s1330_s9  ;;  %v788_v50 = vadd.f32 %v620_v49, %v1477_v46  ;;  %v622_v6 = vmin.f32 %v1477_v46, %v620_v49  ;;  %v629_v7 = vmax.f32 %v1477_v46, %v620_v49  ;;  %s1350_s9 = smov 96  }
  0xc3   : > { %v1515_v51 = vmul.f32 0.5, %v788_v50 }
  0xc5   : > { %649 = vperm.xlu1 %1215, %v1477_v46  }
  0xc6   : > { %v416_v14 = vld [vmem:[#allocation2] sm:$0xff] }
  0xc7   : > { %v417_v16 = vmul.f32 0.00390625, %v416_v14 }
  0xc9   : > { %1116 = vmatmul.mubr.msk.f32.vlgmr.msra.gmra.mrb[0].mxu0 %vm277_vm1, %v417_v16  ;;  %1216 = vset.pattern.permute.xlu1 %v1334_v22 }
  0xca   : > { %670 = vperm.xlu1 %1216, %v1477_v46  }
  0xce   : > { %1217 = vset.pattern.permute.xlu1 %v1335_v23 }
  0xcf   : > { %660 = vperm.xlu1 %1217, %v1477_v46  }
  0xd3   : > { %1218 = vset.pattern.permute.xlu1 %v1336_v24 }
 0x133   : > { %v644_v25 = vpop.permute.xlu1 %643 }
 0x134   : > { %1240 = vrcp.f32 %v644_v25 }
 0x13e   : > { %v1241_v26 = vpop.eup %1240 }
 0x13f   : > { %v647_v27 = vmul.f32 %v1241_v26, %v639_v13 }
 0x141   : > { %675 = vperm.xlu0 %1219, %v647_v27   ;;  %655 = vperm.xlu1 %1218, %v647_v27  }
 0x144   : > { %v650_v54 = vpop.permute.xlu1 %649 }
 0x145   : > { %1220 = vset.pattern.permute.xlu0 %v1337_v28  ;;  %1221 = vset.pattern.permute.xlu1 %v1339_v33 }
 0x146   : > { %680 = vperm.xlu0 %1220, %v1477_v46  }
 0x149   : > { %v671_v55 = vpop.permute.xlu1 %670 }
 0x14a   : > { %1223 = vset.pattern.permute.xlu0 %v1338_v29 }
 0x14b   : > { %716 = vperm.xlu0 %1223, %v647_v27  }
 0x14e   : > { %v661_v56 = vpop.permute.xlu1 %660 }
 0x14f   : > { %1226 = vset.pattern.permute.xlu0 %v1333_v21 }
 0x150   : > { %741 = vperm.xlu0 %1226, %v1477_v46  }
 0x154   : > { %1228 = vset.pattern.permute.xlu0 %v1339_v33 }
 0x19c   : > { %v491_v30 = vpop.f32.mrb[0].mxu0 }
 0x19d   : > { %v495_v31 = vmax.f32 %v491_v30, 0.0  ;;  %v1117_v32 = vpop.f32.mrb[1].mxu0 }
 0x19f   : > { %1127 = vmatmul.mubr.msk.f32.vlgmr.msra.gmra.mrb[0].mxu1 %vm507_vm11, %v495_v31 }
 0x1c0   : > { %v656_v57 = vpop.permute.xlu1 %655  ;;  %v676_v59 = vpop.permute.xlu0 %675 }
 0x1c5   : > { %v681_v3 = vpop.permute.xlu0 %680 }
 0x1ca   : > { %v717_v11 = vpop.permute.xlu0 %716 }
 0x1cf   : > { %v742_v14 = vpop.permute.xlu0 %741 }
 0x272   : > { %v577_v35 = vpop.f32.mrb[0].mxu1 }
 0x273   : > { %v1506_v36 = vadd.f32 %v1092_v34, %v577_v35  ;;  %v1128_v37 = vpop.f32.mrb[1].mxu1 }
 0x275   : > { %v1094_v38 = vmul.f32 -1.442695, %v1506_v36  ;;  %vm590_vm14 = vcmp.gt.f32.partialorder %v1506_v36, 0.0 }
 0x277   : > { %1242 = vpow2.f32 %v1094_v38  ;;  %v761_v38 = vsel %vm590_vm14, 1, %v1335_v23 }
 0x281   : > { %v1243_v39 = vpop.eup %1242 }
 0x282   : > { %v584_v41 = vadd.f32 1.0, %v1243_v39 }
 0x284   : > { %1244 = vrcp.f32 %v584_v41 }
 0x28e   : > { %v1509_v42 = vpop.eup %1244 }
 0x28f   : > { %v589_v43 = vmul.f32 9.6, %v1509_v42  ;;  %v588_v52 = vmul.f32 6.4, %v1509_v42  ;;  %v587_v58 = vmul.f32 16.0, %v1509_v42 }
 0x291   : > { %v598_v44 = vmul.f32 0.5, %v589_v43  ;;  %v591_v53 = vmul.f32 0.5, %v588_v52 }
 0x293   : > { %600 = vrot.lane.b32.xlu1 %v598_v44, %s1340_s17 }
 0x297   : > { %711 = vperm.xlu1 %1221, %v1477_v46  }
 0x29b   : > { %1222 = vset.pattern.permute.xlu1 %v1341_v45 }
 0x29c   : > { %731 = vperm.xlu1 %1222, %v1477_v46  }
 0x2a0   : > { %1224 = vset.pattern.permute.xlu1 %v1342_v47 }
 0x2a1   : > { %736 = vperm.xlu1 %1224, %v647_v27  }
 0x2a5   : > { %1225 = vset.pattern.permute.xlu1 %v1336_v24 }
 0x2a6   : > { %721 = vperm.xlu1 %1225, %v1477_v46  }
 0x2aa   : > { %791 = vrot.lane.b32.xlu1 %v1515_v51, %s1343_s24  ;;  %s1351_s24 = smov [#allocation3]  }
 0x2ab   : > { %1227 = vset.pattern.permute.xlu1 %v1331_v20 }
 0x2ae   : > { %593 = vrot.lane.b32.xlu1 %v591_v53, %s1340_s17  ;;  %s1246_s17 = scalar_lea.vmem %s1666_s13, 128 }
 0x2af   : > { %p1247_p13 = scmp.ne.s32.totalorder %s1666_s13, %s1246_s17 }
 0x2b1   : > { %p1248_p0 = pnand %p1247_p13, %p1422_p4 }
 0x2b3   : > { %p1249_p1 = pneg %p1248_p0 }
 0x305   : > { %v601_v60 = vpop.permute.xlu1 %600 }
 0x306   : > { %v1522_v61 = vsub.f32 %v587_v58, %v601_v60  ;;  %v1524_v62 = vadd.f32 %v601_v60, %v587_v58 }
 0x308   : > { %v652_v63 = vsub.f32 %v1524_v62, %v650_v54  ;;  %v673_v0 = vsub.f32 %v1524_v62, %v671_v55  ;;  %v606_v37 = vsub.f32 %v1524_v62, %v1522_v61  ;;  %v609_v41 = vmul.f32 0.0625, %v1524_v62 }
 0x30a   : > { %v658_v1 = vmul.f32 %v656_v57, %v652_v63  ;;  %v678_v2 = vmul.f32 %v676_v59, %v673_v0  ;;  %v608_v39 = vmul.f32 0.0625, %v606_v37  ;;  %vm610_vm0 = vcmp.gt.f32.partialorder %v609_v41, 0.6 }
 0x30c   : > { %v663_v4 = vadd.f32 %v661_v56, %v658_v1  ;;  %v683_v5 = vadd.f32 %v681_v3, %v678_v2  ;;  %vm611_vm15 = vcmp.lt.f32.partialorder %v608_v39, 0.09821428  ;;  %vm613_vm5 = vcmp.lt.f32.partialorder %v608_v39, 0.04464286 }
 0x30d   : > { %vm612_vm4 = vmand %vm610_vm0, %vm611_vm15 }
 0x30e   : > { %665 = vrot.lane.b32.xlu0 %v663_v4, %s1344_s25  ;;  %685 = vrot.lane.b32.xlu1 %v683_v5, %s1344_s25  ;;  %vm614_vm7 = vmor %vm612_vm4, %vm613_vm5 }
 0x30f   : > { %vm766_vm10 = vmxor %vm614_vm7, %vm1347_vm9 }
 0x310   : > { %v767_v49 = vsel %vm766_vm10, 1, %v1335_v23 }
 0x312   : > { %796 = vrot.lane.b32.xlu0 %v1515_v51, %s1329_s8  ;;  %625 = vperm.xlu1 %1227, %v622_v6  }
 0x316   : > { %v712_v8 = vpop.permute.xlu1 %711  ;;  %632 = vperm.xlu0 %1228, %v629_v7  }
 0x317   : > { %v714_v19 = vsub.f32 %v1524_v62, %v712_v8 }
 0x319   : > { %v719_v21 = vmul.f32 %v717_v11, %v714_v19 }
 0x31a   : > { %1230 = vset.pattern.permute.xlu0 %v1345_v9 }
 0x31b   : > { %v732_v10 = vpop.permute.xlu1 %731 }
 0x31c   : > { %v734_v12 = vsub.f32 %v1524_v62, %v732_v10 }
 0x320   : > { %v737_v13 = vpop.permute.xlu1 %736 }
 0x321   : > { %v739_v15 = vmul.f32 %v737_v13, %v734_v12 }
 0x323   : > { %v744_v16 = vadd.f32 %v742_v14, %v739_v15 }
 0x325   : > { %v722_v17 = vpop.permute.xlu1 %721  ;;  %746 = vrot.lane.b32.xlu0 %v744_v16, %s1344_s25 }
 0x326   : > { %v724_v22 = vadd.f32 %v722_v17, %v719_v21 }
 0x329   : > { %v792_v18 = vpop.permute.xlu1 %791 }
 0x32a   : > { %v794_v46 = vadd.f32 %v792_v18, %v1515_v51 }
 0x32c   : > { %v795_v20 = vmul.f32 0.5, %v794_v46 }
 0x32d   : > { %v594_v24 = vpop.permute.xlu1 %593 }
 0x32e   : > { %803 = vperm.xlu1 %1227, %v795_v20   ;;  %v1540_v25 = vsub.f32 %v587_v58, %v594_v24  ;;  %v1542_v26 = vadd.f32 %v594_v24, %v587_v58 }
 0x330   : > { %v616_v27 = vadd.f32 %v1542_v26, %v1540_v25 }
 0x332   : > { %726 = vrot.lane.b32.xlu1 %v724_v22, %s1344_s25  ;;  %v617_v28 = vmul.f32 0.5, %v616_v27 }
 0x333   : > { %1229 = vset.pattern.permute.xlu1 %v1339_v33 }
 0x380   : > { %v686_v29 = vpop.permute.xlu1 %685  ;;  %v666_v30 = vpop.permute.xlu0 %665 }
 0x381   : > { %vm688_vm12 = vcmp.le.f32.partialorder %v617_v28, %v686_v29  ;;  %vm668_vm13 = vcmp.ge.f32.partialorder %v617_v28, %v666_v30 }
 0x382   : > { %v695_v31 = vsel %vm688_vm12, 1, %v1335_v23  ;;  %v690_v32 = vsel %vm668_vm13, 1, %v1335_v23 }
 0x383   : > { %696 = vrot.lane.b32.xlu0 %v695_v31, %s1346_s27  ;;  %691 = vrot.lane.b32.xlu1 %v690_v32, %s1346_s27 }
 0x384   : > { %v797_v33 = vpop.permute.xlu0 %796 }
 0x385   : > { %v799_v34 = vadd.f32 %v797_v33, %v1515_v51 }
 0x387   : > { %706 = vperm.xlu0 %1230, %v629_v7   ;;  %701 = vperm.xlu1 %1229, %v622_v6   ;;  %v800_v35 = vmul.f32 0.5, %v799_v34 }
 0x38b   : > { %1231 = vset.pattern.permute.xlu1 %v1345_v9 }
 0x38c   : > { %889 = vperm.xlu1 %1231, %v800_v35  }
 0x390   : > { %762 = vrot.lane.b32.xlu1 %v761_v38, %s1344_s25 }
 0x391   : > { %v626_v43 = vpop.permute.xlu1 %625 }
 0x392   : > { %vm628_vm2 = vcmp.ge.f32.partialorder %v1524_v62, %v626_v43 }
 0x395   : > { %v633_v44 = vpop.permute.xlu0 %632 }
 0x396   : > { %vm635_vm3 = vcmp.le.f32.partialorder %v1524_v62, %v633_v44 }
 0x397   : > { %vm1559_vm6 = vmand %vm628_vm2, %vm635_vm3  ;;  %vm605_vm2 = vcmp.gt.f32.partialorder %v1509_v42, 0.75 }
 0x399   : > { %v747_v45 = vpop.permute.xlu0 %746 }
 0x39a   : > { %vm749_vm8 = vcmp.le.f32.partialorder %v617_v28, %v747_v45 }
 0x39b   : > { %v756_v47 = vsel %vm749_vm8, 1, %v1335_v23 }
 0x39c   : > { %757 = vrot.lane.b32.xlu0 %v756_v47, %s1346_s27 }
 0x3a0   : > { %768 = vrot.lane.b32.xlu0 %v767_v49, %s1348_s29 }
 0x3ad   : > { %v804_v50 = vpop.permute.xlu1 %803 }
 0x3ae   : > { %v806_v51 = vsub.f32 %v1524_v62, %v804_v50 }
 0x3b0   : > { %v807_v52 = vand.u32 2147483647, %v806_v51 }
 0x3b1   : > { %v727_v53 = vpop.permute.xlu1 %726 }
 0x3b2   : > { %vm729_vm11 = vcmp.ge.f32.partialorder %v617_v28, %v727_v53  ;;  %809 = vrot.lane.b32.xlu0 %v807_v52, %s1348_s29 }
 0x3b3   : > { %v751_v54 = vsel %vm729_vm11, 1, %v1335_v23 }
 0x3b4   : > { %752 = vrot.lane.b32.xlu1 %v751_v54, %s1346_s27 }
 0x3f5   : > { %v692_v55 = vpop.permute.xlu1 %691  ;;  %v697_v56 = vpop.permute.xlu0 %696 }
 0x3f6   : > { %vm693_vm12 = vcmp.ne.s32.totalorder %v692_v55, 0  ;;  %vm698_vm13 = vcmp.ne.s32.totalorder %v697_v56, 0 }
 0x3f7   : > { %vm694_vm14 = vmand %vm1559_vm6, %vm693_vm12 }
 0x3f8   : > { %vm699_vm15 = vmand %vm694_vm14, %vm698_vm13 }
 0x3f9   : > { %v772_v57 = vsel %vm699_vm15, 1, %v1335_v23  ;;  %vm777_vm0 = vmxor %vm699_vm15, %vm1347_vm9  ;;  %vm813_vm15 = vcmask 326912  }
 0x3fa   : > { %773 = vrot.lane.b32.xlu1 %v772_v57, %s1348_s29  ;;  %v778_v58 = vsel %vm777_vm0, 1, %v1335_v23 }
 0x3fe   : > { %779 = vrot.lane.b32.xlu1 %v778_v58, %s1348_s29 }
 0x406   : > { %v702_v59 = vpop.permute.xlu1 %701  ;;  %v707_v3 = vpop.permute.xlu0 %706 }
 0x407   : > { %vm704_vm5 = vcmp.ge.f32.partialorder %v1524_v62, %v702_v59  ;;  %vm709_vm6 = vcmp.le.f32.partialorder %v1524_v62, %v707_v3 }
 0x408   : > { %vm750_vm7 = vmand %vm704_vm5, %vm709_vm6 }
 0x40b   : > { %v890_v60 = vpop.permute.xlu1 %889 }
 0x40c   : > { %v892_v63 = vsub.f32 %v1524_v62, %v890_v60 }
 0x40e   : > { %v893_v0 = vand.u32 2147483647, %v892_v63  ;;  %v758_v4 = vpop.permute.xlu0 %757 }
 0x40f   : > { %v763_v1 = vpop.permute.xlu1 %762  ;;  %vm759_vm9 = vcmp.ne.s32.totalorder %v758_v4, 0 }
 0x410   : > { %vm764_vm3 = vcmp.ne.s32.totalorder %v763_v1, 0  ;;  %895 = vrot.lane.b32.xlu1 %v893_v0, %s1348_s29 }
 0x411   : > { %vm1582_vm4 = vmand %vm605_vm2, %vm764_vm3 }
 0x412   : > { %v769_v6 = vpop.permute.xlu0 %768 }
 0x413   : > { %vm770_vm12 = vcmp.ne.s32.totalorder %v769_v6, 0 }
 0x414   : > { %819 = vrot.lane.b32.xlu1 %v1481_v48, %s1349_s7  ;;  %vm771_vm13 = vmand %vm1582_vm4, %vm770_vm12 }
 0x424   : > { %v810_v8 = vpop.permute.xlu0 %809 }
 0x426   : > { %v753_v5 = vpop.permute.xlu1 %752 }
 0x427   : > { %vm754_vm8 = vcmp.ne.s32.totalorder %v753_v5, 0 }
 0x428   : > { %vm755_vm10 = vmand %vm750_vm7, %vm754_vm8 }
 0x429   : > { %vm760_vm11 = vmand %vm755_vm10, %vm759_vm9 }
 0x42a   : > { %v783_v42 = vsel %vm760_vm11, 1, %v1335_v23 }
 0x42b   : > { %784 = vrot.lane.b32.xlu0 %v783_v42, %s1348_s29 }
 0x46c   : > { %v774_v7 = vpop.permute.xlu1 %773 }
 0x46d   : > { %vm775_vm14 = vcmp.ne.s32.totalorder %v774_v7, 0 }
 0x46e   : > { %vm1593_vm0 = vmand %vm771_vm13, %vm775_vm14 }
 0x46f   : > { %v812_v10 = vsel %vm1593_vm0, %v810_v8, inf  ;;  %v1096_v39 = vsel %vm1593_vm0, 1.0, %v1326_v40 }
 0x470   : > { %v814_v23 = vsel %vm813_vm15, %v812_v10, inf  ;;  %v780_v11 = vpop.permute.xlu1 %779 }
 0x471   : > { %815 = vmin.xlane.f32.xlu0 %v814_v23  ;;  %vm781_vm2 = vcmp.ne.s32.totalorder %v780_v11, 0 }
 0x472   : > { %vm782_vm3 = vmand %vm771_vm13, %vm781_vm2  ;;  %vm846_vm13 = vcmask 64512  }
 0x482   : > { %v896_v13 = vpop.permute.xlu1 %895 }
 0x486   : > { %v820_v18 = vpop.permute.xlu1 %819 }
 0x49d   : > { %v785_v12 = vpop.permute.xlu0 %784 }
 0x49e   : > { %vm786_vm5 = vcmp.ne.s32.totalorder %v785_v12, 0 }
 0x49f   : > { %vm1600_vm4 = vmand %vm782_vm3, %vm786_vm5  ;;  %vm973_vm5 = vcmask 31744  }
 0x4a0   : > { %v898_v15 = vsel %vm1600_vm4, %v896_v13, inf  ;;  %v1098_v59 = vsel %vm1600_vm4, 1.0, %v1326_v40 }
 0x4a1   : > { %v899_v16 = vsel %vm813_vm15, %v898_v15, inf }
 0x4a2   : > { %900 = vmin.xlane.f32.xlu1 %v899_v16 }
 0x4fe   : > { %v816_v17 = vpop.xlane.xlu0 %815 }
 0x4ff   : > { %vm817_vm6 = vcmp.le.f32.partialorder %v812_v10, %v816_v17 }
 0x500   : > { %vm818_vm7 = vmand %vm1593_vm0, %vm817_vm6  ;;  %vm881_vm0 = vcmask 15360   ;;  %vm978_vm6 = vcmask 80896  }
 0x501   : > { %v821_v19 = vsel %vm818_vm7, %v820_v18, 8 }
 0x502   : > { %v822_v46 = vsel %vm813_vm15, %v821_v19, 2147483647 }
 0x503   : > { %v824_v20 = vshra.s32 %v822_v46, 16  ;;  %v823_v30 = vand.u32 65535, %v822_v46 }
 0x505   : > { %v826_v21 = vcvt.s32.f32 %v824_v20  ;;  %v825_v32 = vcvt.s32.f32 %v823_v30 }
 0x507   : > { %827 = vmin.xlane.f32.xlu0 %v826_v21 }
 0x52f   : > { %v901_v22 = vpop.xlane.xlu1 %900 }
 0x530   : > { %vm902_vm8 = vcmp.le.f32.partialorder %v898_v15, %v901_v22 }
 0x531   : > { %vm903_vm9 = vmand %vm1600_vm4, %vm902_vm8  ;;  %vm976_vm4 = vcmask 72704  }
 0x532   : > { %v904_v24 = vsel %vm903_vm9, %v820_v18, 8 }
 0x533   : > { %v905_v27 = vsel %vm813_vm15, %v904_v24, 2147483647  ;;  %vm879_vm15 = vcmask 7168  }
 0x534   : > { %v907_v28 = vshra.s32 %v905_v27, 16  ;;  %v906_v34 = vand.u32 65535, %v905_v27 }
 0x536   : > { %v909_v29 = vcvt.s32.f32 %v907_v28  ;;  %v908_v37 = vcvt.s32.f32 %v906_v34 }
 0x538   : > { %910 = vmin.xlane.f32.xlu0 %v909_v29 }
 0x594   : > { %v828_v31 = vpop.xlane.xlu0 %827 }
 0x595   : > { %vm829_vm10 = vcmp.eq.f32.partialorder %v826_v21, %v828_v31  ;;  %v834_v41 = vcvt.f32.s32 %v828_v31 }
 0x596   : > { %v830_v33 = vsel %vm829_vm10, %v825_v32, inf }
 0x597   : > { %831 = vmin.xlane.f32.xlu0 %v830_v33  ;;  %v835_v44 = vshll.u32 %v834_v41, 16 }
 0x5c5   : > { %v911_v35 = vpop.xlane.xlu0 %910 }
 0x5c6   : > { %vm912_vm11 = vcmp.eq.f32.partialorder %v909_v29, %v911_v35  ;;  %v917_v49 = vcvt.f32.s32 %v911_v35 }
 0x5c7   : > { %v913_v38 = vsel %vm912_vm11, %v908_v37, inf }
 0x5c8   : > { %914 = vmin.xlane.f32.xlu0 %v913_v38  ;;  %v918_v51 = vshll.u32 %v917_v49, 16 }
 0x5de   : > { %843 = vrot.lane.b32.xlu0 %v1096_v39, %s1350_s9 }
 0x624   : > { %v832_v43 = vpop.xlane.xlu0 %831 }
 0x625   : > { %v833_v36 = vcvt.f32.s32 %v832_v43 }
 0x627   : > { %v836_v45 = vadd.s32 %v835_v44, %v833_v36 }
 0x629   : > { %vm837_vm12 = vcmp.eq.s32.totalorder %v1481_v48, %v836_v45 }
 0x62a   : > { %v1095_v47 = vsel %vm837_vm12, 1.0, %v1326_v40 }
 0x62b   : > { %856 = vrot.lane.b32.xlu1 %v1095_v47, %s1346_s27  ;;  %v867_v56 = vmul.f32 %v1095_v47, %v1542_v26  ;;  %v851_v0 = vmul.f32 %v1095_v47, %v1540_v25 }
 0x62d   : > { %v868_v58 = vsel %vm846_vm13, %v867_v56, 0.0  ;;  %v852_v1 = vsel %vm846_vm13, %v851_v0, 0.0 }
 0x655   : > { %v915_v50 = vpop.xlane.xlu0 %914 }
 0x656   : > { %v916_v52 = vcvt.f32.s32 %v915_v50 }
 0x658   : > { %v919_v53 = vadd.s32 %v918_v51, %v916_v52 }
 0x659   : > { %v844_v54 = vpop.permute.xlu0 %843 }
 0x65a   : > { %v847_v55 = vsel %vm846_vm13, %v844_v54, 0.0  ;;  %vm920_vm14 = vcmp.eq.s32.totalorder %v1481_v48, %v919_v53 }
 0x65b   : > { %848 = vadd.xlane.f32.xlu1 %v847_v55  ;;  %v1097_v57 = vsel %vm920_vm14, 1.0, %v1326_v40 }
 0x65c   : > { %938 = vrot.lane.b32.xlu0 %v1097_v57, %s1346_s27  ;;  %v933_v4 = vmul.f32 %v1097_v57, %v1540_v25  ;;  %v949_v11 = vmul.f32 %v1097_v57, %v1542_v26 }
 0x65e   : > { %v934_v5 = vsel %vm846_vm13, %v933_v4, 0.0  ;;  %v950_v13 = vsel %vm846_vm13, %v949_v11, 0.0 }
 0x65f   : > { %869 = vadd.xlane.f32.xlu1 %v868_v58 }
 0x670   : > { %926 = vrot.lane.b32.xlu1 %v1098_v59, %s1350_s9 }
 0x69d   : > { %v857_v60 = vpop.permute.xlu1 %856 }
 0x69e   : > { %v859_v63 = vmul.f32 %v857_v60, %v1522_v61  ;;  %v871_v48 = vmul.f32 %v857_v60, %v1524_v62 }
 0x6a0   : > { %861 = vrot.lane.b32.xlu0 %v859_v63, %s1344_s25 }
 0x6a4   : > { %873 = vrot.lane.b32.xlu0 %v871_v48, %s1344_s25 }
 0x6c3   : > { %853 = vadd.xlane.f32.xlu0 %v852_v1 }
 0x6ce   : > { %v939_v2 = vpop.permute.xlu0 %938 }
 0x6cf   : > { %v941_v3 = vmul.f32 %v939_v2, %v1522_v61  ;;  %v953_v9 = vmul.f32 %v939_v2, %v1524_v62 }
 0x6d9   : > { %943 = vrot.lane.b32.xlu0 %v941_v3, %s1344_s25 }
 0x6e8   : > { %v849_v61 = vpop.xlane.xlu1 %848 }
 0x6e9   : > { %vm850_vm2 = vcmp.gt.f32.partialorder %v849_v61, 0.0 }
 0x6ea   : > { %v1100_v37 = vsel %vm850_vm2, 1.0, %v1326_v40 }
 0x6ec   : > { %v870_v10 = vpop.xlane.xlu1 %869 }
 0x6f0   : > { %v927_v23 = vpop.permute.xlu1 %926 }
 0x6f1   : > { %v929_v25 = vsel %vm846_vm13, %v927_v23, 0.0 }
 0x6f8   : > { %935 = vadd.xlane.f32.xlu0 %v934_v5 }
 0x712   : > { %v862_v42 = vpop.permute.xlu0 %861 }
 0x713   : > { %v864_v6 = vsel %vm846_vm13, %v862_v42, 0.0 }
 0x714   : > { %865 = vadd.xlane.f32.xlu1 %v864_v6 }
 0x716   : > { %v874_v7 = vpop.permute.xlu0 %873 }
 0x717   : > { %v876_v8 = vsel %vm846_vm13, %v874_v7, 0.0 }
 0x718   : > { %877 = vadd.xlane.f32.xlu1 %v876_v8 }
 0x729   : > { %955 = vrot.lane.b32.xlu1 %v953_v9, %s1344_s25  ;;  %s1250_s25 = sshll.u32 %s1351_s24, 4  ;;  %s1251_s25 = int_to_ptr.vmem [resolvable:$false] %s1250_s25 }
 0x72a   : > { %s1252_s27 = scalar_lea.vmem %s1251_s25, 256  ;;  %p1253_p2 = scmp.lt.s32.totalorder %s1666_s13, %s1251_s25 }
 0x72b   : > { %p1254_p3 = scmp.lt.s32.totalorder %s1252_s27, %s1246_s17 }
 0x72d   : > { %p1255_p5 = por %p1254_p3, %p1253_p2 }
 0x72f   : > { %p1256_p6 = pnand %p1255_p5, %p1249_p1 }
 0x74d   : > { %930 = vadd.xlane.f32.xlu1 %v929_v25 }
 0x750   : > { %v854_v12 = vpop.xlane.xlu0 %853 }
 0x751   : > { %951 = vadd.xlane.f32.xlu1 %v950_v13 }
 0x754   : > { %v944_v14 = vpop.permute.xlu0 %943 }
 0x755   : > { %v946_v15 = vsel %vm846_vm13, %v944_v14, 0.0 }
 0x756   : > { %947 = vadd.xlane.f32.xlu0 %v946_v15 }
 0x785   : > { %v936_v21 = vpop.xlane.xlu0 %935 }
 0x7a1   : > { %v866_v62 = vpop.xlane.xlu1 %865 }
 0x7a2   : > { %v880_v16 = vsel %vm879_vm15, %v854_v12, %v866_v62 }
 0x7a3   : > { %v882_v18 = vsel %vm881_vm0, %v880_v16, %v870_v10 }
 0x7a5   : > { %v878_v17 = vpop.xlane.xlu1 %877 }
 0x7a6   : > { %v883_v26 = vsel %vm277_vm1, %v882_v18, %v878_v17 }
 0x7a7   : > { %v886_v19 = vsel %vm850_vm2, %v883_v26, 0.0 }
 0x7a8   : > { %970 = vrot.lane.b32.xlu1 %v886_v19, %s1329_s8  ;;  %s1102_s8 = sshll.u32 %s1316_s21, 7  ;;  %s982_s21 = scalar_lea.sflag [#allocation4], %s254_s10 }
 0x7a9   : > { %v956_v46 = vpop.permute.xlu1 %955  ;;  %s1664_s16 = scalar_lea.hbm %s1716_s5, %s1102_s8 }
 0x7aa   : > { %v958_v20 = vsel %vm846_vm13, %v956_v46, 0.0 }
 0x7ab   : > { %959 = vadd.xlane.f32.xlu0 %v958_v20 }
 0x7da   : > { %v931_v22 = vpop.xlane.xlu1 %930 }
 0x7db   : > { %vm932_vm3 = vcmp.gt.f32.partialorder %v931_v22, 0.0 }
 0x7dc   : > { %v1099_v34 = vsel %vm932_vm3, 1.0, %v1326_v40 }
 0x7de   : > { %v952_v28 = vpop.xlane.xlu1 %951 }
 0x7e3   : > { %v948_v24 = vpop.xlane.xlu0 %947 }
 0x7e4   : > { %v961_v27 = vsel %vm879_vm15, %v936_v21, %v948_v24 }
 0x7e5   : > { %v962_v29 = vsel %vm881_vm0, %v961_v27, %v952_v28 }
 0x81a   : > { %v971_v32 = vpop.permute.xlu1 %970 }
 0x838   : > { %v960_v30 = vpop.xlane.xlu0 %959 }
 0x839   : > { %v963_v31 = vsel %vm277_vm1, %v962_v29, %v960_v30 }
 0x83a   : > { %v966_v33 = vsel %vm932_vm3, %v963_v31, 0.0 }
 0x83b   : > { %v974_v35 = vsel %vm973_vm5, %v966_v33, %v971_v32 }
 0x83c   : > { %v975_v38 = vsel %vm846_vm13, %v974_v35, %v1099_v34 }
 0x83d   : > { %v977_v39 = vsel %vm976_vm4, %v975_v38, %v1100_v37 }
 0x83e   : > { %v979_v41 = vsel %vm978_vm6, %v977_v39, 0.0 }
 0x83f   : > { %980 = vst [vmem:[%s256_s12] sm:$0xff] %v979_v41 }
 0x840   : > { %1259 = shalt.err (!%p1256_p6)
}
 0x841   : > { %s1260_s29 = scalar_lea.hbm %s1664_s16, 128  ;;  %s1264_s10 = scalar_lea.hbm %s1716_s5, 256 }
 0x842   : > { %p1261_p7 = scmp.ne.s32.totalorder %s1664_s16, %s1260_s29  ;;  %p1265_p11 = scmp.lt.u32.totalorder %s1664_s16, %s1716_s5 }
 0x843   : > { %p1266_p12 = scmp.lt.u32.totalorder %s1264_s10, %s1260_s29  ;;  %p1268_p0 = scmp.lt.u32.totalorder %s1260_s29, %s1664_s16 }
 0x844   : > { %p1262_p9 = pnand %p1261_p7, %p1422_p4 }
 0x845   : > { %p1267_p13 = por %p1266_p12, %p1265_p11 }
 0x846   : > { %p1263_p10 = pneg %p1262_p9 }
 0x847   : > { %p1269_p1 = por %p1268_p0, %p1267_p13 }
 0x849   : > { %p1270_p2 = pnand %p1269_p1, %p1263_p10 }
 0x84b   : > { %1273 = shalt.err (!%p1270_p2)
}
 0x84c   : > { %1135 = dma.vmem_to_hbm [thread:$0]  (%p1422_p4), %s1666_s13, 128, %s1664_s16, %s982_s21  }
 0x84d PF: > { %p1141_p3 = scmp.ge.s32.totalorder %s1324_s23, 2  ;;  %s1007_s12 = sand.u32 1, %s1304_s18  }
 0x84e   : > { %s1008_s14 = scalar_lea.sflag [#allocation4], %s1007_s12 }
 0x84f   : > { %p1138_p5 = pnand %p1141_p3, %p1429_p8 }
 0x851   : > { %1299 = dma.done.wait (!%p1138_p5), %s1008_s14, 128  }
 0x852   : > { %1301 = vsyncadd (!%p1138_p5), %s1008_s14, 4294967168  ;;  %s18_s23 = sadd.s32 1, %s1324_s23   ;;  %s1727_s18 = smov %s1308_s19 }
 0x853   : > { %p15_p6 = scmp.ge.s32.totalorder %s18_s23, 4   ;;  %s1728_s19 = smov %s1312_s20 }
 0x854   : > { %s1729_s20 = smov %s1435_s6  ;;  %s1730_s21 = smov %s1320_s22 }
 0x855   : > { %s1731_s22 = smov %s1733_s26  ;;  %17 = sbr.rel (!%p15_p6) target bundleno = 4 (0x4), region = 86 }
 0x85c   :  { %1013 = vsyncpa [#allocation4], 1 }
 0x85d   :  { %1015 = vsyncpa [#allocation4 + $0x1], 1 }

</bundles_post_ra>
